<compile_context>
chip_gen: v5e
topology: v5e:2x2
jax: 0.10.0
libtpu: 0.0.40
codegen_flags: <defaults>
</compile_context>

<pallas_src>
import functools

import jax
import jax.numpy as jnp
import numpy as np
from jax.experimental import pallas as pl
from jax.experimental.pallas import tpu as pltpu


# ---------------------------------------------------------------------------
# Pallas kernel: fused bidirectional GRU + attention pooling + log-softmax
# ---------------------------------------------------------------------------
def _han_kernel(
    xcat_ref,     # (S, 2I)    row t = [x_t | x_{S-1-t}]
    h0_ref,       # (1, 2H)    [h0_fwd | h0_bwd]
    wih_ref,      # (2I, 6H)   fused input weights, columns [r_f r_b z_f z_b n_f n_b]
    bih_ref,      # (1, 6H)
    whh_ref,      # (2H, 6H)   block-structured recurrent weights, same column order
    bhh_ref,      # (1, 6H)
    flip_ref,     # (S, S)     time-flip permutation matrix
    watt_ref,     # (2H, H+5)  [Ws^T | Wc^T]
    ws_b_ref,     # (1, H)
    us_ref,       # (H, 1)     Us^T
    us_b_ref,     # (1, 1)
    wc_b_ref,     # (1, 5)
    logp_ref,     # out: (1, 5)   log-softmax class scores
    hidden_ref,   # out: (1, 2H)  [h_fwd_final | h_bwd_final]
):
    S = xcat_ref.shape[0]
    H2 = h0_ref.shape[1]          # 2H
    H = H2 // 2

    # ---- hoisted input projection: one batched matmul for both directions ----
    gi_all = (
        jnp.dot(xcat_ref[...], wih_ref[...], preferred_element_type=jnp.float32)
        + bih_ref[...]
    )                                                               # (S, 6H)

    whh = whh_ref[...]
    bhh = bhh_ref[...]

    # ---- fused bidirectional recurrence, fully unrolled -----------------------
    # TODO(synk): hold `whh` in the MXU weight registers across the 8 unrolled
    # steps (pltpu.matmul_push_rhs once + per-step matmul_acc_lhs/matmul_pop;
    # split N across two staging registers on v5e, pop r/z early via the MRB on
    # v7x).  Left on jnp.dot here to guarantee clean lowering.
    h = h0_ref[...]                                                 # (1, 2H)
    h_rows = []
    for i in range(S):                                              # static unroll
        gi = gi_all[i:i + 1, :]                                     # (1, 6H), static slice
        gh = jnp.dot(h, whh, preferred_element_type=jnp.float32) + bhh
        # one fused sigmoid over the contiguous [r_f r_b z_f z_b] lanes (2*H2)
        rz = jax.nn.sigmoid(gi[:, 0:2 * H2] + gh[:, 0:2 * H2])      # (1, 2*H2)
        r = rz[:, 0:H2]
        z = rz[:, H2:2 * H2]
        n = jnp.tanh(gi[:, 2 * H2:3 * H2] + r * gh[:, 2 * H2:3 * H2])
        h = n + z * (h - n)                                         # == (1-z)*n + z*h
        h_rows.append(h)

    # final hidden: fwd half is h_f(S-1), bwd half is h_b after processing x[0]
    hidden_ref[...] = h

    # Assemble the attention slab in time order:
    #   h_all[i] = [h_f(i) | h_b(S-1-i)]  ->  out[t] = [h_f(t) | h_b(t)]
    # Backward half is time-reversed via a tiny (S,S) permutation matmul.
    h_all = jnp.concatenate(h_rows, axis=0)                         # (S, 2H)
    out_bwd = jnp.dot(flip_ref[...], h_all[:, H:H2],
                      preferred_element_type=jnp.float32)           # (S, H)
    out = jnp.concatenate([h_all[:, 0:H], out_bwd], axis=1)         # (S, 2H)

    # ---- fused attention + classifier projection: one MXU call ---------------
    scores = jnp.dot(out, watt_ref[...], preferred_element_type=jnp.float32)  # (S, H+5)
    uit = jnp.tanh(scores[:, 0:H] + ws_b_ref[...])                  # (S, H)
    u = jnp.dot(uit, us_ref[...], preferred_element_type=jnp.float32) + us_b_ref[...]  # (S, 1)

    u_max = jnp.max(u, axis=0, keepdims=True)
    e = jnp.exp(u - u_max)
    a = e / jnp.sum(e, axis=0, keepdims=True)                       # softmax over seq, (S, 1)

    # logits = sum_t a[t] * (out[t] @ Wc) + b  (vi never materialized)
    logits = jnp.sum(a * scores[:, H:H + 5], axis=0, keepdims=True) + wc_b_ref[...]  # (1, 5)
    m = jnp.max(logits, axis=1, keepdims=True)
    lse = m + jnp.log(jnp.sum(jnp.exp(logits - m), axis=1, keepdims=True))
    logp_ref[...] = logits - lse


# ---------------------------------------------------------------------------
# Host-side weight fusion (done ONCE, outside the per-call path)
# ---------------------------------------------------------------------------
def _fuse_bidir_gru_params(params, input_size, hidden_size):
    H = hidden_size
    I = input_size
    wf, wb = params["wih_f_T"], params["wih_b_T"]     # (I, 3H), gate order r, z, n
    uf, ub = params["whh_f_T"], params["whh_b_T"]     # (H, 3H)
    dt = wf.dtype

    def interleave(f, b):
        # (..., 3H) per direction -> (..., 6H) ordered [r_f r_b z_f z_b n_f n_b]
        return jnp.concatenate(
            [f[..., 0:H], b[..., 0:H],
             f[..., H:2 * H], b[..., H:2 * H],
             f[..., 2 * H:3 * H], b[..., 2 * H:3 * H]], axis=-1)

    # W_ih fused: rows 0:I multiply x[t] (fwd), rows I:2I multiply x[S-1-t] (bwd)
    zI = jnp.zeros((I, H), dt)
    wih_fused = jnp.concatenate([
        jnp.concatenate([wf[:, 0:H], zI, wf[:, H:2 * H], zI, wf[:, 2 * H:3 * H], zI], axis=1),
        jnp.concatenate([zI, wb[:, 0:H], zI, wb[:, H:2 * H], zI, wb[:, 2 * H:3 * H]], axis=1),
    ], axis=0)                                        # (2I, 6H)
    bih_fused = interleave(params["bih_f"], params["bih_b"])        # (1, 6H)

    # W_hh fused: rows 0:H (h_f) feed the fwd gate columns, rows H:2H (h_b) the bwd ones
    zH = jnp.zeros((H, H), dt)
    whh_fused = jnp.concatenate([
        jnp.concatenate([uf[:, 0:H], zH, uf[:, H:2 * H], zH, uf[:, 2 * H:3 * H], zH], axis=1),
        jnp.concatenate([zH, ub[:, 0:H], zH, ub[:, H:2 * H], zH, ub[:, 2 * H:3 * H]], axis=1),
    ], axis=0)                                        # (2H, 6H)
    bhh_fused = interleave(params["bhh_f"], params["bhh_b"])        # (1, 6H)

    return wih_fused, bih_fused, whh_fused, bhh_fused


def prepare_fused_params(params, input_size, hidden_size, seq_len):
    """Call-invariant layout plumbing, executed once; results stay device-resident."""
    wih, bih, whh, bhh = _fuse_bidir_gru_params(params, input_size, hidden_size)
    watt = jnp.concatenate([params["ws_T"], params["wc_T"]], axis=1)        # (2H, H+5)
    flip = jnp.asarray(np.eye(seq_len, dtype=np.float32)[::-1])             # (S, S)
    fused = {
        "wih": wih, "bih": bih, "whh": whh, "bhh": bhh,
        "flip": flip, "watt": watt,
        "ws_b": params["ws_b"], "us_T": params["us_T"], "us_b": params["us_b"],
        "wc_b": params["wc_b"],
    }
    return jax.tree_util.tree_map(jnp.asarray, fused)


# ---------------------------------------------------------------------------
# Wrapper (jitted: x pairing / reshapes fuse with the pallas_call dispatch)
# ---------------------------------------------------------------------------
@functools.partial(jax.jit, static_argnames=())
def han_sentence_encoder(x, h0, fused):
    """x: (S, 1, I) float32, h0: (2, 1, H) float32. Returns (logp (1,5), hidden (2,1,H))."""
    S, B, I = x.shape
    assert B == 1, "original module's attention reshape assumes batch == 1"
    H = h0.shape[2]

    x2 = x.reshape(S, I)
    # Pair each time step with its time-reversed partner so the kernel's hoisted
    # projection yields fwd(t) and bwd(S-1-t) gate pre-activations in one row.
    x_cat = jnp.concatenate([x2, x2[::-1]], axis=1)                 # (S, 2I)
    h0_row = h0.reshape(1, 2 * H)                                   # [h0_fwd | h0_bwd]

    inputs = (
        x_cat, h0_row,
        fused["wih"], fused["bih"], fused["whh"], fused["bhh"],
        fused["flip"], fused["watt"], fused["ws_b"],
        fused["us_T"], fused["us_b"], fused["wc_b"],
    )

    vmem = pl.BlockSpec(memory_space=pltpu.MemorySpace.VMEM)
    logp, hidden = pl.pallas_call(
        _han_kernel,
        out_shape=(
            jax.ShapeDtypeStruct((1, 5), jnp.float32),
            jax.ShapeDtypeStruct((1, 2 * H), jnp.float32),
        ),
        in_specs=[vmem] * len(inputs),
        out_specs=(vmem, vmem),
    )(*inputs)

    return logp, hidden.reshape(2, 1, H)


# ---------------------------------------------------------------------------
# Pure-JAX reference (mirrors the PyTorch forward exactly, un-fused params)
# ---------------------------------------------------------------------------
def han_reference(x, h0, params):
    S, B, I = x.shape
    H = h0.shape[2]
    x2 = x.reshape(S, I)

    def gru_dir(wih_T, whh_T, bih, bhh, h_init, reverse):
        ts = range(S - 1, -1, -1) if reverse else range(S)
        h = h_init
        outs = [None] * S
        for t in ts:
            xt = x2[t:t + 1]
            gi = xt @ wih_T + bih
            gh = h @ whh_T + bhh
            r = jax.nn.sigmoid(gi[:, 0:H] + gh[:, 0:H])
            z = jax.nn.sigmoid(gi[:, H:2 * H] + gh[:, H:2 * H])
            n = jnp.tanh(gi[:, 2 * H:3 * H] + r * gh[:, 2 * H:3 * H])
            h = (1.0 - z) * n + z * h
            outs[t] = h
        return jnp.concatenate(outs, axis=0), h

    out_f, hf = gru_dir(params["wih_f_T"], params["whh_f_T"], params["bih_f"],
                        params["bhh_f"], h0[0], False)
    out_b, hb = gru_dir(params["wih_b_T"], params["whh_b_T"], params["bih_b"],
                        params["bhh_b"], h0[1], True)
    out = jnp.concatenate([out_f, out_b], axis=1)                   # (S, 2H)

    uit = jnp.tanh(out @ params["ws_T"] + params["ws_b"])
    u = uit @ params["us_T"] + params["us_b"]                       # (S, 1)
    a = jax.nn.softmax(u, axis=0)
    vi = jnp.sum(a * out, axis=0, keepdims=True)                    # (1, 2H)
    logits = vi @ params["wc_T"] + params["wc_b"]
    logp = jax.nn.log_softmax(logits, axis=1)
    return logp, jnp.stack([hf, hb], axis=0)


# ---------------------------------------------------------------------------
if __name__ == "__main__":
    SEQ, INPUT, HIDDEN = 8, 16, 32   # small shapes; batch fixed to 1 by the module

    key = jax.random.PRNGKey(0)
    keys = jax.random.split(key, 16)

    def nrm(k, shape, scale):
        return (scale * jax.random.normal(k, shape)).astype(jnp.float32)

    s_gru = 1.0 / np.sqrt(HIDDEN)
    params = {
        # GRU forward direction (weights stored pre-transposed; gate order r,z,n)
        "wih_f_T": nrm(keys[0], (INPUT, 3 * HIDDEN), s_gru),
        "whh_f_T": nrm(keys[1], (HIDDEN, 3 * HIDDEN), s_gru),
        "bih_f":   nrm(keys[2], (1, 3 * HIDDEN), s_gru),
        "bhh_f":   nrm(keys[3], (1, 3 * HIDDEN), s_gru),
        # GRU backward direction
        "wih_b_T": nrm(keys[4], (INPUT, 3 * HIDDEN), s_gru),
        "whh_b_T": nrm(keys[5], (HIDDEN, 3 * HIDDEN), s_gru),
        "bih_b":   nrm(keys[6], (1, 3 * HIDDEN), s_gru),
        "bhh_b":   nrm(keys[7], (1, 3 * HIDDEN), s_gru),
        # Ws: Linear(2H -> H), xavier-normal-ish scale
        "ws_T": nrm(keys[8], (2 * HIDDEN, HIDDEN), np.sqrt(2.0 / (3 * HIDDEN))),
        "ws_b": nrm(keys[9], (1, HIDDEN), 0.01),
        # Us: Linear(H -> 1)
        "us_T": nrm(keys[10], (HIDDEN, 1), np.sqrt(2.0 / (HIDDEN + 1))),
        "us_b": nrm(keys[11], (1, 1), 0.01),
        # Wc: Linear(2H -> 5)
        "wc_T": nrm(keys[12], (2 * HIDDEN, 5), 1.0 / np.sqrt(2 * HIDDEN)),
        "wc_b": nrm(keys[13], (1, 5), 0.01),
    }

    x = jax.random.normal(keys[14], (SEQ, 1, INPUT), dtype=jnp.float32)
    # forward() accepts any hidden; use a non-zero one to exercise the h0 path
    h0 = 0.1 * jax.random.normal(keys[15], (2, 1, HIDDEN), dtype=jnp.float32)

    # Weight fusion is hoisted out of the per-call path (call-invariant).
    fused = prepare_fused_params(params, INPUT, HIDDEN, SEQ)
    jax.block_until_ready(fused)

    logp, hidden = han_sentence_encoder(x, h0, fused)
    jax.block_until_ready((logp, hidden))

    logp_ref, hidden_ref = han_reference(x, h0, params)
    np.testing.assert_allclose(np.asarray(logp), np.asarray(logp_ref), rtol=1e-4, atol=1e-4)
    np.testing.assert_allclose(np.asarray(hidden), np.asarray(hidden_ref), rtol=1e-4, atol=1e-4)

    print("KERNEL_OK")
</pallas_src>

<mosaic_0001>
module attributes {stable_mosaic.version = 11 : i64} {
  func.func @_han_kernel(%arg0: memref<8x32xf32, #tpu.memory_space<vmem>>, %arg1: memref<1x64xf32, #tpu.memory_space<vmem>>, %arg2: memref<32x192xf32, #tpu.memory_space<vmem>>, %arg3: memref<1x192xf32, #tpu.memory_space<vmem>>, %arg4: memref<64x192xf32, #tpu.memory_space<vmem>>, %arg5: memref<1x192xf32, #tpu.memory_space<vmem>>, %arg6: memref<8x8xf32, #tpu.memory_space<vmem>>, %arg7: memref<64x37xf32, #tpu.memory_space<vmem>>, %arg8: memref<1x32xf32, #tpu.memory_space<vmem>>, %arg9: memref<32x1xf32, #tpu.memory_space<vmem>>, %arg10: memref<1x1xf32, #tpu.memory_space<vmem>>, %arg11: memref<1x5xf32, #tpu.memory_space<vmem>>, %arg12: memref<1x5xf32, #tpu.memory_space<vmem>>, %arg13: memref<1x64xf32, #tpu.memory_space<vmem>>) attributes {dimension_semantics = [], scalar_prefetch = 0 : i64, scratch_operands = 0 : i64, tpu.core_type = #tpu.core_type<tc>} {
    %c0 = arith.constant 0 : index
    %c0_0 = arith.constant 0 : index
    %0 = vector.load %arg0[%c0, %c0_0] : memref<8x32xf32, #tpu.memory_space<vmem>>, vector<8x32xf32>
    %c0_1 = arith.constant 0 : index
    %c0_2 = arith.constant 0 : index
    %1 = vector.load %arg2[%c0_1, %c0_2] : memref<32x192xf32, #tpu.memory_space<vmem>>, vector<32x192xf32>
    %cst = arith.constant dense<0.000000e+00> : vector<8x192xf32>
    %2 = tpu.matmul %0, %1, %cst {dimension_numbers = #tpu.dot_dimension_numbers<[1], [0], [0], [1], [0, 0, 1, 1], [], []>} : vector<8x32xf32>, vector<32x192xf32>, vector<8x192xf32> -> vector<8x192xf32>
    %c0_3 = arith.constant 0 : index
    %c0_4 = arith.constant 0 : index
    %3 = vector.load %arg3[%c0_3, %c0_4] : memref<1x192xf32, #tpu.memory_space<vmem>>, vector<1x192xf32>
    %4 = vector.broadcast %3 : vector<1x192xf32> to vector<8x192xf32>
    %5 = arith.addf %2, %4 : vector<8x192xf32>
    %c0_5 = arith.constant 0 : index
    %c0_6 = arith.constant 0 : index
    %6 = vector.load %arg4[%c0_5, %c0_6] : memref<64x192xf32, #tpu.memory_space<vmem>>, vector<64x192xf32>
    %c0_7 = arith.constant 0 : index
    %c0_8 = arith.constant 0 : index
    %7 = vector.load %arg5[%c0_7, %c0_8] : memref<1x192xf32, #tpu.memory_space<vmem>>, vector<1x192xf32>
    %c0_9 = arith.constant 0 : index
    %c0_10 = arith.constant 0 : index
    %8 = vector.load %arg1[%c0_9, %c0_10] : memref<1x64xf32, #tpu.memory_space<vmem>>, vector<1x64xf32>
    %9 = vector.extract_strided_slice %5 {offsets = [0, 0], sizes = [1, 192], strides = [1, 1]} : vector<8x192xf32> to vector<1x192xf32>
    %cst_11 = arith.constant dense<0.000000e+00> : vector<1x192xf32>
    %10 = tpu.matmul %8, %6, %cst_11 {dimension_numbers = #tpu.dot_dimension_numbers<[1], [0], [0], [1], [0, 0, 1, 1], [], []>} : vector<1x64xf32>, vector<64x192xf32>, vector<1x192xf32> -> vector<1x192xf32>
    %11 = arith.addf %10, %7 : vector<1x192xf32>
    %12 = vector.extract_strided_slice %9 {offsets = [0, 0], sizes = [1, 128], strides = [1, 1]} : vector<1x192xf32> to vector<1x128xf32>
    %13 = vector.extract_strided_slice %11 {offsets = [0, 0], sizes = [1, 128], strides = [1, 1]} : vector<1x192xf32> to vector<1x128xf32>
    %14 = arith.addf %12, %13 : vector<1x128xf32>
    %15 = arith.negf %14 : vector<1x128xf32>
    %16 = math.exp %15 : vector<1x128xf32>
    %cst_12 = arith.constant 1.000000e+00 : f32
    %17 = vector.broadcast %cst_12 : f32 to vector<1x128xf32>
    %18 = arith.addf %17, %16 : vector<1x128xf32>
    %19 = arith.divf %17, %18 : vector<1x128xf32>
    %20 = vector.extract_strided_slice %19 {offsets = [0, 0], sizes = [1, 64], strides = [1, 1]} : vector<1x128xf32> to vector<1x64xf32>
    %21 = vector.extract_strided_slice %19 {offsets = [0, 64], sizes = [1, 64], strides = [1, 1]} : vector<1x128xf32> to vector<1x64xf32>
    %22 = vector.extract_strided_slice %9 {offsets = [0, 128], sizes = [1, 64], strides = [1, 1]} : vector<1x192xf32> to vector<1x64xf32>
    %23 = vector.extract_strided_slice %11 {offsets = [0, 128], sizes = [1, 64], strides = [1, 1]} : vector<1x192xf32> to vector<1x64xf32>
    %24 = arith.mulf %20, %23 : vector<1x64xf32>
    %25 = arith.addf %22, %24 : vector<1x64xf32>
    %26 = math.tanh %25 : vector<1x64xf32>
    %27 = arith.subf %8, %26 : vector<1x64xf32>
    %28 = arith.mulf %21, %27 : vector<1x64xf32>
    %29 = arith.addf %26, %28 : vector<1x64xf32>
    %30 = vector.extract_strided_slice %5 {offsets = [1, 0], sizes = [1, 192], strides = [1, 1]} : vector<8x192xf32> to vector<1x192xf32>
    %cst_13 = arith.constant dense<0.000000e+00> : vector<1x192xf32>
    %31 = tpu.matmul %29, %6, %cst_13 {dimension_numbers = #tpu.dot_dimension_numbers<[1], [0], [0], [1], [0, 0, 1, 1], [], []>} : vector<1x64xf32>, vector<64x192xf32>, vector<1x192xf32> -> vector<1x192xf32>
    %32 = arith.addf %31, %7 : vector<1x192xf32>
    %33 = vector.extract_strided_slice %30 {offsets = [0, 0], sizes = [1, 128], strides = [1, 1]} : vector<1x192xf32> to vector<1x128xf32>
    %34 = vector.extract_strided_slice %32 {offsets = [0, 0], sizes = [1, 128], strides = [1, 1]} : vector<1x192xf32> to vector<1x128xf32>
    %35 = arith.addf %33, %34 : vector<1x128xf32>
    %36 = arith.negf %35 : vector<1x128xf32>
    %37 = math.exp %36 : vector<1x128xf32>
    %cst_14 = arith.constant 1.000000e+00 : f32
    %38 = vector.broadcast %cst_14 : f32 to vector<1x128xf32>
    %39 = arith.addf %38, %37 : vector<1x128xf32>
    %40 = arith.divf %38, %39 : vector<1x128xf32>
    %41 = vector.extract_strided_slice %40 {offsets = [0, 0], sizes = [1, 64], strides = [1, 1]} : vector<1x128xf32> to vector<1x64xf32>
    %42 = vector.extract_strided_slice %40 {offsets = [0, 64], sizes = [1, 64], strides = [1, 1]} : vector<1x128xf32> to vector<1x64xf32>
    %43 = vector.extract_strided_slice %30 {offsets = [0, 128], sizes = [1, 64], strides = [1, 1]} : vector<1x192xf32> to vector<1x64xf32>
    %44 = vector.extract_strided_slice %32 {offsets = [0, 128], sizes = [1, 64], strides = [1, 1]} : vector<1x192xf32> to vector<1x64xf32>
    %45 = arith.mulf %41, %44 : vector<1x64xf32>
    %46 = arith.addf %43, %45 : vector<1x64xf32>
    %47 = math.tanh %46 : vector<1x64xf32>
    %48 = arith.subf %29, %47 : vector<1x64xf32>
    %49 = arith.mulf %42, %48 : vector<1x64xf32>
    %50 = arith.addf %47, %49 : vector<1x64xf32>
    %51 = vector.extract_strided_slice %5 {offsets = [2, 0], sizes = [1, 192], strides = [1, 1]} : vector<8x192xf32> to vector<1x192xf32>
    %cst_15 = arith.constant dense<0.000000e+00> : vector<1x192xf32>
    %52 = tpu.matmul %50, %6, %cst_15 {dimension_numbers = #tpu.dot_dimension_numbers<[1], [0], [0], [1], [0, 0, 1, 1], [], []>} : vector<1x64xf32>, vector<64x192xf32>, vector<1x192xf32> -> vector<1x192xf32>
    %53 = arith.addf %52, %7 : vector<1x192xf32>
    %54 = vector.extract_strided_slice %51 {offsets = [0, 0], sizes = [1, 128], strides = [1, 1]} : vector<1x192xf32> to vector<1x128xf32>
    %55 = vector.extract_strided_slice %53 {offsets = [0, 0], sizes = [1, 128], strides = [1, 1]} : vector<1x192xf32> to vector<1x128xf32>
    %56 = arith.addf %54, %55 : vector<1x128xf32>
    %57 = arith.negf %56 : vector<1x128xf32>
    %58 = math.exp %57 : vector<1x128xf32>
    %cst_16 = arith.constant 1.000000e+00 : f32
    %59 = vector.broadcast %cst_16 : f32 to vector<1x128xf32>
    %60 = arith.addf %59, %58 : vector<1x128xf32>
    %61 = arith.divf %59, %60 : vector<1x128xf32>
    %62 = vector.extract_strided_slice %61 {offsets = [0, 0], sizes = [1, 64], strides = [1, 1]} : vector<1x128xf32> to vector<1x64xf32>
    %63 = vector.extract_strided_slice %61 {offsets = [0, 64], sizes = [1, 64], strides = [1, 1]} : vector<1x128xf32> to vector<1x64xf32>
    %64 = vector.extract_strided_slice %51 {offsets = [0, 128], sizes = [1, 64], strides = [1, 1]} : vector<1x192xf32> to vector<1x64xf32>
    %65 = vector.extract_strided_slice %53 {offsets = [0, 128], sizes = [1, 64], strides = [1, 1]} : vector<1x192xf32> to vector<1x64xf32>
    %66 = arith.mulf %62, %65 : vector<1x64xf32>
    %67 = arith.addf %64, %66 : vector<1x64xf32>
    %68 = math.tanh %67 : vector<1x64xf32>
    %69 = arith.subf %50, %68 : vector<1x64xf32>
    %70 = arith.mulf %63, %69 : vector<1x64xf32>
    %71 = arith.addf %68, %70 : vector<1x64xf32>
    %72 = vector.extract_strided_slice %5 {offsets = [3, 0], sizes = [1, 192], strides = [1, 1]} : vector<8x192xf32> to vector<1x192xf32>
    %cst_17 = arith.constant dense<0.000000e+00> : vector<1x192xf32>
    %73 = tpu.matmul %71, %6, %cst_17 {dimension_numbers = #tpu.dot_dimension_numbers<[1], [0], [0], [1], [0, 0, 1, 1], [], []>} : vector<1x64xf32>, vector<64x192xf32>, vector<1x192xf32> -> vector<1x192xf32>
    %74 = arith.addf %73, %7 : vector<1x192xf32>
    %75 = vector.extract_strided_slice %72 {offsets = [0, 0], sizes = [1, 128], strides = [1, 1]} : vector<1x192xf32> to vector<1x128xf32>
    %76 = vector.extract_strided_slice %74 {offsets = [0, 0], sizes = [1, 128], strides = [1, 1]} : vector<1x192xf32> to vector<1x128xf32>
    %77 = arith.addf %75, %76 : vector<1x128xf32>
    %78 = arith.negf %77 : vector<1x128xf32>
    %79 = math.exp %78 : vector<1x128xf32>
    %cst_18 = arith.constant 1.000000e+00 : f32
    %80 = vector.broadcast %cst_18 : f32 to vector<1x128xf32>
    %81 = arith.addf %80, %79 : vector<1x128xf32>
    %82 = arith.divf %80, %81 : vector<1x128xf32>
    %83 = vector.extract_strided_slice %82 {offsets = [0, 0], sizes = [1, 64], strides = [1, 1]} : vector<1x128xf32> to vector<1x64xf32>
    %84 = vector.extract_strided_slice %82 {offsets = [0, 64], sizes = [1, 64], strides = [1, 1]} : vector<1x128xf32> to vector<1x64xf32>
    %85 = vector.extract_strided_slice %72 {offsets = [0, 128], sizes = [1, 64], strides = [1, 1]} : vector<1x192xf32> to vector<1x64xf32>
    %86 = vector.extract_strided_slice %74 {offsets = [0, 128], sizes = [1, 64], strides = [1, 1]} : vector<1x192xf32> to vector<1x64xf32>
    %87 = arith.mulf %83, %86 : vector<1x64xf32>
    %88 = arith.addf %85, %87 : vector<1x64xf32>
    %89 = math.tanh %88 : vector<1x64xf32>
    %90 = arith.subf %71, %89 : vector<1x64xf32>
    %91 = arith.mulf %84, %90 : vector<1x64xf32>
    %92 = arith.addf %89, %91 : vector<1x64xf32>
    %93 = vector.extract_strided_slice %5 {offsets = [4, 0], sizes = [1, 192], strides = [1, 1]} : vector<8x192xf32> to vector<1x192xf32>
    %cst_19 = arith.constant dense<0.000000e+00> : vector<1x192xf32>
    %94 = tpu.matmul %92, %6, %cst_19 {dimension_numbers = #tpu.dot_dimension_numbers<[1], [0], [0], [1], [0, 0, 1, 1], [], []>} : vector<1x64xf32>, vector<64x192xf32>, vector<1x192xf32> -> vector<1x192xf32>
    %95 = arith.addf %94, %7 : vector<1x192xf32>
    %96 = vector.extract_strided_slice %93 {offsets = [0, 0], sizes = [1, 128], strides = [1, 1]} : vector<1x192xf32> to vector<1x128xf32>
    %97 = vector.extract_strided_slice %95 {offsets = [0, 0], sizes = [1, 128], strides = [1, 1]} : vector<1x192xf32> to vector<1x128xf32>
    %98 = arith.addf %96, %97 : vector<1x128xf32>
    %99 = arith.negf %98 : vector<1x128xf32>
    %100 = math.exp %99 : vector<1x128xf32>
    %cst_20 = arith.constant 1.000000e+00 : f32
    %101 = vector.broadcast %cst_20 : f32 to vector<1x128xf32>
    %102 = arith.addf %101, %100 : vector<1x128xf32>
    %103 = arith.divf %101, %102 : vector<1x128xf32>
    %104 = vector.extract_strided_slice %103 {offsets = [0, 0], sizes = [1, 64], strides = [1, 1]} : vector<1x128xf32> to vector<1x64xf32>
    %105 = vector.extract_strided_slice %103 {offsets = [0, 64], sizes = [1, 64], strides = [1, 1]} : vector<1x128xf32> to vector<1x64xf32>
    %106 = vector.extract_strided_slice %93 {offsets = [0, 128], sizes = [1, 64], strides = [1, 1]} : vector<1x192xf32> to vector<1x64xf32>
    %107 = vector.extract_strided_slice %95 {offsets = [0, 128], sizes = [1, 64], strides = [1, 1]} : vector<1x192xf32> to vector<1x64xf32>
    %108 = arith.mulf %104, %107 : vector<1x64xf32>
    %109 = arith.addf %106, %108 : vector<1x64xf32>
    %110 = math.tanh %109 : vector<1x64xf32>
    %111 = arith.subf %92, %110 : vector<1x64xf32>
    %112 = arith.mulf %105, %111 : vector<1x64xf32>
    %113 = arith.addf %110, %112 : vector<1x64xf32>
    %114 = vector.extract_strided_slice %5 {offsets = [5, 0], sizes = [1, 192], strides = [1, 1]} : vector<8x192xf32> to vector<1x192xf32>
    %cst_21 = arith.constant dense<0.000000e+00> : vector<1x192xf32>
    %115 = tpu.matmul %113, %6, %cst_21 {dimension_numbers = #tpu.dot_dimension_numbers<[1], [0], [0], [1], [0, 0, 1, 1], [], []>} : vector<1x64xf32>, vector<64x192xf32>, vector<1x192xf32> -> vector<1x192xf32>
    %116 = arith.addf %115, %7 : vector<1x192xf32>
    %117 = vector.extract_strided_slice %114 {offsets = [0, 0], sizes = [1, 128], strides = [1, 1]} : vector<1x192xf32> to vector<1x128xf32>
    %118 = vector.extract_strided_slice %116 {offsets = [0, 0], sizes = [1, 128], strides = [1, 1]} : vector<1x192xf32> to vector<1x128xf32>
    %119 = arith.addf %117, %118 : vector<1x128xf32>
    %120 = arith.negf %119 : vector<1x128xf32>
    %121 = math.exp %120 : vector<1x128xf32>
    %cst_22 = arith.constant 1.000000e+00 : f32
    %122 = vector.broadcast %cst_22 : f32 to vector<1x128xf32>
    %123 = arith.addf %122, %121 : vector<1x128xf32>
    %124 = arith.divf %122, %123 : vector<1x128xf32>
    %125 = vector.extract_strided_slice %124 {offsets = [0, 0], sizes = [1, 64], strides = [1, 1]} : vector<1x128xf32> to vector<1x64xf32>
    %126 = vector.extract_strided_slice %124 {offsets = [0, 64], sizes = [1, 64], strides = [1, 1]} : vector<1x128xf32> to vector<1x64xf32>
    %127 = vector.extract_strided_slice %114 {offsets = [0, 128], sizes = [1, 64], strides = [1, 1]} : vector<1x192xf32> to vector<1x64xf32>
    %128 = vector.extract_strided_slice %116 {offsets = [0, 128], sizes = [1, 64], strides = [1, 1]} : vector<1x192xf32> to vector<1x64xf32>
    %129 = arith.mulf %125, %128 : vector<1x64xf32>
    %130 = arith.addf %127, %129 : vector<1x64xf32>
    %131 = math.tanh %130 : vector<1x64xf32>
    %132 = arith.subf %113, %131 : vector<1x64xf32>
    %133 = arith.mulf %126, %132 : vector<1x64xf32>
    %134 = arith.addf %131, %133 : vector<1x64xf32>
    %135 = vector.extract_strided_slice %5 {offsets = [6, 0], sizes = [1, 192], strides = [1, 1]} : vector<8x192xf32> to vector<1x192xf32>
    %cst_23 = arith.constant dense<0.000000e+00> : vector<1x192xf32>
    %136 = tpu.matmul %134, %6, %cst_23 {dimension_numbers = #tpu.dot_dimension_numbers<[1], [0], [0], [1], [0, 0, 1, 1], [], []>} : vector<1x64xf32>, vector<64x192xf32>, vector<1x192xf32> -> vector<1x192xf32>
    %137 = arith.addf %136, %7 : vector<1x192xf32>
    %138 = vector.extract_strided_slice %135 {offsets = [0, 0], sizes = [1, 128], strides = [1, 1]} : vector<1x192xf32> to vector<1x128xf32>
    %139 = vector.extract_strided_slice %137 {offsets = [0, 0], sizes = [1, 128], strides = [1, 1]} : vector<1x192xf32> to vector<1x128xf32>
    %140 = arith.addf %138, %139 : vector<1x128xf32>
    %141 = arith.negf %140 : vector<1x128xf32>
    %142 = math.exp %141 : vector<1x128xf32>
    %cst_24 = arith.constant 1.000000e+00 : f32
    %143 = vector.broadcast %cst_24 : f32 to vector<1x128xf32>
    %144 = arith.addf %143, %142 : vector<1x128xf32>
    %145 = arith.divf %143, %144 : vector<1x128xf32>
    %146 = vector.extract_strided_slice %145 {offsets = [0, 0], sizes = [1, 64], strides = [1, 1]} : vector<1x128xf32> to vector<1x64xf32>
    %147 = vector.extract_strided_slice %145 {offsets = [0, 64], sizes = [1, 64], strides = [1, 1]} : vector<1x128xf32> to vector<1x64xf32>
    %148 = vector.extract_strided_slice %135 {offsets = [0, 128], sizes = [1, 64], strides = [1, 1]} : vector<1x192xf32> to vector<1x64xf32>
    %149 = vector.extract_strided_slice %137 {offsets = [0, 128], sizes = [1, 64], strides = [1, 1]} : vector<1x192xf32> to vector<1x64xf32>
    %150 = arith.mulf %146, %149 : vector<1x64xf32>
    %151 = arith.addf %148, %150 : vector<1x64xf32>
    %152 = math.tanh %151 : vector<1x64xf32>
    %153 = arith.subf %134, %152 : vector<1x64xf32>
    %154 = arith.mulf %147, %153 : vector<1x64xf32>
    %155 = arith.addf %152, %154 : vector<1x64xf32>
    %156 = vector.extract_strided_slice %5 {offsets = [7, 0], sizes = [1, 192], strides = [1, 1]} : vector<8x192xf32> to vector<1x192xf32>
    %cst_25 = arith.constant dense<0.000000e+00> : vector<1x192xf32>
    %157 = tpu.matmul %155, %6, %cst_25 {dimension_numbers = #tpu.dot_dimension_numbers<[1], [0], [0], [1], [0, 0, 1, 1], [], []>} : vector<1x64xf32>, vector<64x192xf32>, vector<1x192xf32> -> vector<1x192xf32>
    %158 = arith.addf %157, %7 : vector<1x192xf32>
    %159 = vector.extract_strided_slice %156 {offsets = [0, 0], sizes = [1, 128], strides = [1, 1]} : vector<1x192xf32> to vector<1x128xf32>
    %160 = vector.extract_strided_slice %158 {offsets = [0, 0], sizes = [1, 128], strides = [1, 1]} : vector<1x192xf32> to vector<1x128xf32>
    %161 = arith.addf %159, %160 : vector<1x128xf32>
    %162 = arith.negf %161 : vector<1x128xf32>
    %163 = math.exp %162 : vector<1x128xf32>
    %cst_26 = arith.constant 1.000000e+00 : f32
    %164 = vector.broadcast %cst_26 : f32 to vector<1x128xf32>
    %165 = arith.addf %164, %163 : vector<1x128xf32>
    %166 = arith.divf %164, %165 : vector<1x128xf32>
    %167 = vector.extract_strided_slice %166 {offsets = [0, 0], sizes = [1, 64], strides = [1, 1]} : vector<1x128xf32> to vector<1x64xf32>
    %168 = vector.extract_strided_slice %166 {offsets = [0, 64], sizes = [1, 64], strides = [1, 1]} : vector<1x128xf32> to vector<1x64xf32>
    %169 = vector.extract_strided_slice %156 {offsets = [0, 128], sizes = [1, 64], strides = [1, 1]} : vector<1x192xf32> to vector<1x64xf32>
    %170 = vector.extract_strided_slice %158 {offsets = [0, 128], sizes = [1, 64], strides = [1, 1]} : vector<1x192xf32> to vector<1x64xf32>
    %171 = arith.mulf %167, %170 : vector<1x64xf32>
    %172 = arith.addf %169, %171 : vector<1x64xf32>
    %173 = math.tanh %172 : vector<1x64xf32>
    %174 = arith.subf %155, %173 : vector<1x64xf32>
    %175 = arith.mulf %168, %174 : vector<1x64xf32>
    %176 = arith.addf %173, %175 : vector<1x64xf32>
    %c0_27 = arith.constant 0 : index
    %c0_28 = arith.constant 0 : index
    %177 = vector.load %arg13[%c0_27, %c0_28] : memref<1x64xf32, #tpu.memory_space<vmem>>, vector<1x64xf32>
    tpu.vector_store %arg13[%c0_27, %c0_28], %176 {strides = array<i32>} : memref<1x64xf32, #tpu.memory_space<vmem>>, vector<1x64xf32>,
    %178 = tpu.concatenate %29, %50, %71, %92, %113, %134, %155, %176 in 0 : vector<1x64xf32>, vector<1x64xf32>, vector<1x64xf32>, vector<1x64xf32>, vector<1x64xf32>, vector<1x64xf32>, vector<1x64xf32>, vector<1x64xf32> -> vector<8x64xf32>
    %c0_29 = arith.constant 0 : index
    %c0_30 = arith.constant 0 : index
    %179 = vector.load %arg6[%c0_29, %c0_30] : memref<8x8xf32, #tpu.memory_space<vmem>>, vector<8x8xf32>
    %180 = vector.extract_strided_slice %178 {offsets = [0, 32], sizes = [8, 32], strides = [1, 1]} : vector<8x64xf32> to vector<8x32xf32>
    %cst_31 = arith.constant dense<0.000000e+00> : vector<8x32xf32>
    %181 = tpu.matmul %179, %180, %cst_31 {dimension_numbers = #tpu.dot_dimension_numbers<[1], [0], [0], [1], [0, 0, 1, 1], [], []>} : vector<8x8xf32>, vector<8x32xf32>, vector<8x32xf32> -> vector<8x32xf32>
    %182 = vector.extract_strided_slice %178 {offsets = [0, 0], sizes = [8, 32], strides = [1, 1]} : vector<8x64xf32> to vector<8x32xf32>
    %183 = tpu.concatenate %182, %181 in 1 : vector<8x32xf32>, vector<8x32xf32> -> vector<8x64xf32>
    %c0_32 = arith.constant 0 : index
    %c0_33 = arith.constant 0 : index
    %184 = vector.load %arg7[%c0_32, %c0_33] : memref<64x37xf32, #tpu.memory_space<vmem>>, vector<64x37xf32>
    %cst_34 = arith.constant dense<0.000000e+00> : vector<8x37xf32>
    %185 = tpu.matmul %183, %184, %cst_34 {dimension_numbers = #tpu.dot_dimension_numbers<[1], [0], [0], [1], [0, 0, 1, 1], [], []>} : vector<8x64xf32>, vector<64x37xf32>, vector<8x37xf32> -> vector<8x37xf32>
    %186 = vector.extract_strided_slice %185 {offsets = [0, 0], sizes = [8, 32], strides = [1, 1]} : vector<8x37xf32> to vector<8x32xf32>
    %c0_35 = arith.constant 0 : index
    %c0_36 = arith.constant 0 : index
    %187 = vector.load %arg8[%c0_35, %c0_36] : memref<1x32xf32, #tpu.memory_space<vmem>>, vector<1x32xf32>
    %188 = vector.broadcast %187 : vector<1x32xf32> to vector<8x32xf32>
    %189 = arith.addf %186, %188 : vector<8x32xf32>
    %190 = math.tanh %189 : vector<8x32xf32>
    %c0_37 = arith.constant 0 : index
    %c0_38 = arith.constant 0 : index
    %191 = vector.load %arg9[%c0_37, %c0_38] : memref<32x1xf32, #tpu.memory_space<vmem>>, vector<32x1xf32>
    %cst_39 = arith.constant dense<0.000000e+00> : vector<8x1xf32>
    %192 = tpu.matmul %190, %191, %cst_39 {dimension_numbers = #tpu.dot_dimension_numbers<[1], [0], [0], [1], [0, 0, 1, 1], [], []>} : vector<8x32xf32>, vector<32x1xf32>, vector<8x1xf32> -> vector<8x1xf32>
    %c0_40 = arith.constant 0 : index
    %c0_41 = arith.constant 0 : index
    %193 = vector.load %arg10[%c0_40, %c0_41] : memref<1x1xf32, #tpu.memory_space<vmem>>, vector<1x1xf32>
    %194 = vector.broadcast %193 : vector<1x1xf32> to vector<8x1xf32>
    %195 = arith.addf %192, %194 : vector<8x1xf32>
    %cst_42 = arith.constant dense<0xFF800000> : vector<1xf32>
    %196 = vector.multi_reduction <maximumf>, %195, %cst_42 [0] : vector<8x1xf32> to vector<1xf32>
    %197 = vector.shape_cast %196 : vector<1xf32> to vector<1x1xf32>
    %198 = vector.broadcast %197 : vector<1x1xf32> to vector<8x1xf32>
    %199 = arith.subf %195, %198 : vector<8x1xf32>
    %200 = math.exp %199 : vector<8x1xf32>
    %cst_43 = arith.constant dense<0.000000e+00> : vector<1xf32>
    %201 = vector.multi_reduction <add>, %200, %cst_43 [0] : vector<8x1xf32> to vector<1xf32>
    %202 = vector.shape_cast %201 : vector<1xf32> to vector<1x1xf32>
    %203 = vector.broadcast %202 : vector<1x1xf32> to vector<8x1xf32>
    %204 = arith.divf %200, %203 : vector<8x1xf32>
    %205 = vector.extract_strided_slice %185 {offsets = [0, 32], sizes = [8, 5], strides = [1, 1]} : vector<8x37xf32> to vector<8x5xf32>
    %206 = vector.broadcast %204 : vector<8x1xf32> to vector<8x5xf32>
    %207 = arith.mulf %206, %205 : vector<8x5xf32>
    %cst_44 = arith.constant dense<0.000000e+00> : vector<5xf32>
    %208 = vector.multi_reduction <add>, %207, %cst_44 [0] : vector<8x5xf32> to vector<5xf32>
    %209 = vector.shape_cast %208 : vector<5xf32> to vector<1x5xf32>
    %c0_45 = arith.constant 0 : index
    %c0_46 = arith.constant 0 : index
    %210 = vector.load %arg11[%c0_45, %c0_46] : memref<1x5xf32, #tpu.memory_space<vmem>>, vector<1x5xf32>
    %211 = arith.addf %209, %210 : vector<1x5xf32>
    %cst_47 = arith.constant dense<0xFF800000> : vector<1xf32>
    %212 = vector.multi_reduction <maximumf>, %211, %cst_47 [1] : vector<1x5xf32> to vector<1xf32>
    %213 = vector.shape_cast %212 : vector<1xf32> to vector<1x1xf32>
    %214 = vector.broadcast %213 : vector<1x1xf32> to vector<1x5xf32>
    %215 = arith.subf %211, %214 : vector<1x5xf32>
    %216 = math.exp %215 : vector<1x5xf32>
    %cst_48 = arith.constant dense<0.000000e+00> : vector<1xf32>
    %217 = vector.multi_reduction <add>, %216, %cst_48 [1] : vector<1x5xf32> to vector<1xf32>
    %218 = vector.shape_cast %217 : vector<1xf32> to vector<1x1xf32>
    %219 = math.log %218 : vector<1x1xf32>
    %220 = arith.addf %213, %219 : vector<1x1xf32>
    %221 = vector.broadcast %220 : vector<1x1xf32> to vector<1x5xf32>
    %222 = arith.subf %211, %221 : vector<1x5xf32>
    %c0_49 = arith.constant 0 : index
    %c0_50 = arith.constant 0 : index
    %223 = vector.load %arg12[%c0_49, %c0_50] : memref<1x5xf32, #tpu.memory_space<vmem>>, vector<1x5xf32>
    tpu.vector_store %arg12[%c0_49, %c0_50], %222 {strides = array<i32>} : memref<1x5xf32, #tpu.memory_space<vmem>>, vector<1x5xf32>,
    return
  }
}

</mosaic_0001>

<bundles_post_ra>
// kernel: han_sentence_encoder.1
= control target key start
LH: loop header
LB: loop body
LE: loop exit
PB: predicated region body
PF: predicated region fallthrough
CT: control target
= control target key end

     0   :  { %s1681_s0 = inlined_call_operand.vmem [shape: f32[8,32], index: 0, kind: input, shape index: {}]   ;;  %s1682_s1 = inlined_call_operand.vmem [shape: f32[1,64], index: 1, kind: input, shape index: {}]   ;;  %s1683_s2 = inlined_call_operand.hbm [shape: f32[32,192], index: 2, kind: input, shape index: {}]   ;;  %s1684_s3 = inlined_call_operand.vmem [shape: f32[1,192], index: 3, kind: input, shape index: {}]   ;;  %s1685_s4 = inlined_call_operand.vmem [shape: f32[64,192], index: 4, kind: input, shape index: {}]   ;;  %s1686_s5 = inlined_call_operand.vmem [shape: f32[1,192], index: 5, kind: input, shape index: {}]   ;;  %s1687_s6 = inlined_call_operand.vmem [shape: f32[8,8], index: 6, kind: input, shape index: {}]   ;;  %s1688_s7 = inlined_call_operand.vmem [shape: f32[64,37], index: 7, kind: input, shape index: {}]   ;;  %s1689_s8 = inlined_call_operand.vmem [shape: f32[1,32], index: 8, kind: input, shape index: {}]   ;;  %s1690_s9 = inlined_call_operand.vmem [shape: f32[32,1], index: 9, kind: input, shape index: {}]   ;;  %s1691_s10 = inlined_call_operand.<no memory space> [shape: f32[1,1], index: 10, kind: input, shape index: {}]   ;;  %s1692_s11 = inlined_call_operand.vmem [shape: f32[1,5], index: 11, kind: input, shape index: {}]   ;;  %s1693_s12 = inlined_call_operand.hbm [shape: f32[1,5], index: 12, kind: output, shape index: {0}]   ;;  %s1694_s13 = inlined_call_operand.vmem [shape: f32[1,64], index: 13, kind: output, shape index: {1}]  }
   0x1   :  { %v19_v0 = vstv %s1691_s10 }
   0x2   :  { %20 = vst [vmem:[#allocation2] sm:$0x1] %v19_v0 }
   0x3   :  { %21 = vsyncpa [#allocation4], 0 }
   0x4   :  { %22 = vsyncpa [#allocation5], 0  ;;  %s31_s29 = sshll.u32 %s1683_s2, 4  ;;  %s1206_s30 = smov [#allocation3]   ;;  %s32_s29 = int_to_ptr.hbm [resolvable:$true] %s31_s29 }
   0x5   :  { %s33_s14 = sshll.u32 %s1206_s30, 4  ;;  %s1207_s15 = smov 256   ;;  %s34_s14 = int_to_ptr.vmem [resolvable:$true] %s33_s14 }
   0x6   :  { %s1208_s16 = smov 16  }
   0x7   :  { %39 = dma.hbm_to_vmem [thread:$0]  %s32_s29, 1024, %s34_s14, [#allocation4], %s1207_s15, %s1207_s15, %s1208_s16  }
   0x8   :  { %1202 = dma.done.wait [#allocation4], 1024  }
   0x9   :  { %1203 = vsyncadd [#allocation4], 4294966272  ;;  %v1293_v1 = vld [vmem:[%s1685_s4 + $0x70] sm:$0xff]  ;;  %v1298_v2 = vld [vmem:[%s1685_s4 + $0x60] sm:$0xff]  ;;  %vm77_vm0 = vcmask 261120   ;;  %vm144_vm1 = vcmask 523264  }
   0xa   :  { %156 = vmatpush.msra.mxu2 %v1293_v1  ;;  %v1304_v3 = vld [vmem:[%s1685_s4 + $0x50] sm:$0xff]  ;;  %v67_v5 = vld [vmem:[#allocation3 + $0x20] sm:$0xff]  ;;  %v1315_v8 = vld [vmem:[%s1685_s4 + $0x78] sm:$0xff]  ;;  %s1210_s17 = smov 96  }
   0xb   :  { %v69_v4 = vld [vmem:[#allocation3 + $0x30] sm:$0xff]  ;;  %v1310_v6 = vld [vmem:[%s1685_s4 + $0x40] sm:$0xff]  ;;  %v1321_v9 = vld [vmem:[%s1685_s4 + $0x68] sm:$0xff]  ;;  %176 = vmatpush.msra.mxu3 %v1315_v8 }
   0xc   :  { %157 = vmatpush.msra.mxu2 %v1298_v2  ;;  %93 = vmatpush.msra.mxu0 %v69_v4  ;;  %v65_v7 = vld [vmem:[#allocation3 + $0x10] sm:$0xff]  ;;  %v63_v11 = vld [vmem:[#allocation3] sm:$0xff]  ;;  %v70_v14 = vld [vmem:[#allocation3 + $0x38] sm:$0xff] }
   0xd   :  { %v1326_v10 = vld [vmem:[%s1685_s4 + $0x30] sm:$0xff]  ;;  %v62_v12 = vld [vmem:[%s1681_s0] sm:$0xff]  ;;  %v1336_v13 = vld [vmem:[%s1685_s4 + $0x58] sm:$0xff]  ;;  %177 = vmatpush.msra.mxu3 %v1321_v9  ;;  %113 = vmatpush.msra.mxu1 %v70_v14 }
   0xe   :  { %158 = vmatpush.msra.mxu2 %v1304_v3  ;;  %94 = vmatpush.msra.mxu0 %v67_v5  ;;  %v1341_v15 = vld [vmem:[%s1685_s4 + $0x20] sm:$0xff]  ;;  %v68_v16 = vld [vmem:[#allocation3 + $0x28] sm:$0xff]  ;;  %v1361_v20 = vld [vmem:[%s1685_s4 + $0x38] sm:$0xff] }
   0xf   :  { %v1348_v17 = vld [vmem:[%s1685_s4 + $0x48] sm:$0xff]  ;;  %v1353_v18 = vld [vmem:[%s1685_s4 + $0x10] sm:$0xff]  ;;  %178 = vmatpush.msra.mxu3 %v1336_v13  ;;  %v66_v19 = vld [vmem:[#allocation3 + $0x18] sm:$0xff]  ;;  %114 = vmatpush.msra.mxu1 %v68_v16 }
  0x10   :  { %159 = vmatpush.msra.mxu2 %v1310_v6  ;;  %95 = vmatpush.msra.mxu0 %v65_v7  ;;  %v1366_v21 = vld [vmem:[%s1685_s4] sm:$0xff]  ;;  %v64_v22 = vld [vmem:[#allocation3 + $0x8] sm:$0xff]  ;;  %v1387_v25 = vld [vmem:[%s1685_s4 + $0x18] sm:$0xff] }
  0x11   :  { %179 = vmatpush.msra.mxu3 %v1348_v17  ;;  %v1374_v23 = vld [vmem:[%s1682_s1] sm:$0x1]  ;;  %v1379_v24 = vld [vmem:[%s1685_s4 + $0x28] sm:$0xff]  ;;  %115 = vmatpush.msra.mxu1 %v66_v19  ;;  %s1211_s1 = smov 32  }
  0x12   :  { %160 = vmatpush.msra.mxu2 %v1326_v10  ;;  %96 = vmatpush.msra.mxu0 %v63_v11  ;;  %v1395_v26 = vld [vmem:[%s1685_s4 + $0x8] sm:$0xff]  ;;  %v71_v27 = vld [vmem:[%s1684_s3] sm:$0x3]  ;;  %s1209_s3 = smov 64  }
  0x13   :  { %1055 = vmatmul.msk.f32.vlgmr.msra.gmra.mxu0 %vm77_vm0, %v62_v12  ;;  %180 = vmatpush.msra.mxu3 %v1361_v20  ;;  %v137_v28 = vld [vmem:[%s1686_s5] sm:$0x3]  ;;  %v73_v29 = vperm.slane %v71_v27, 0  ;;  %v74_v47 = vperm.slane %v71_v27, 1 }
  0x14   :  { %161 = vmatpush.msra.mxu2 %v1341_v15  ;;  %234 = vmatpush.msrb.mxu0 %v1293_v1  ;;  %v1470_v31 = vperm.slane %v137_v28, 0  ;;  %v1476_v41 = vperm.slane %v137_v28, 1 }
  0x15   :  { %116 = vmatpush.msra.mxu1 %v64_v22  ;;  %181 = vmatpush.msra.mxu3 %v1379_v24 }
  0x16   :  { %162 = vmatpush.msra.mxu2 %v1353_v18  ;;  %235 = vmatpush.msrb.mxu0 %v1298_v2 }
  0x17   :  { %1056 = vmatmul.msk.f32.vlgmr.msra.gmra.mxu1 %vm77_vm0, %v62_v12  ;;  %182 = vmatpush.msra.mxu3 %v1387_v25 }
  0x18   :  { %163 = vmatpush.msra.mxu2 %v1366_v21  ;;  %236 = vmatpush.msrb.mxu0 %v1304_v3 }
  0x19   :  { %1057 = vmatmul.msk.f32.vlgmr.msra.gmra.mxu2 %vm144_vm1, %v1374_v23  ;;  %254 = vmatpush.msrb.mxu1 %v1315_v8 }
  0x1a   :  { %237 = vmatpush.msrb.mxu0 %v1310_v6  ;;  %322 = vmatpush.msrb.mxu2 %v1293_v1 }
  0x1b   :  { %183 = vmatpush.msra.mxu3 %v1395_v26  ;;  %255 = vmatpush.msrb.mxu1 %v1321_v9 }
  0x1c   :  { %1058 = vmatmul.msk.f32.vlgmr.msra.gmra.mxu3 %vm144_vm1, %v1374_v23  ;;  %238 = vmatpush.msrb.mxu0 %v1326_v10 }
  0x1d   :  { %256 = vmatpush.msrb.mxu1 %v1336_v13  ;;  %342 = vmatpush.msrb.mxu3 %v1315_v8 }
  0x1e   :  { %239 = vmatpush.msrb.mxu0 %v1341_v15  ;;  %323 = vmatpush.msrb.mxu2 %v1298_v2 }
  0x1f   :  { %257 = vmatpush.msrb.mxu1 %v1348_v17  ;;  %343 = vmatpush.msrb.mxu3 %v1321_v9 }
  0x20   :  { %240 = vmatpush.msrb.mxu0 %v1353_v18  ;;  %324 = vmatpush.msrb.mxu2 %v1304_v3 }
  0x21   :  { %258 = vmatpush.msrb.mxu1 %v1361_v20  ;;  %344 = vmatpush.msrb.mxu3 %v1336_v13 }
  0x22   :  { %241 = vmatpush.msrb.mxu0 %v1366_v21  ;;  %325 = vmatpush.msrb.mxu2 %v1310_v6 }
  0x23   :  { %259 = vmatpush.msrb.mxu1 %v1379_v24  ;;  %345 = vmatpush.msrb.mxu3 %v1348_v17 }
  0x24   :  { %326 = vmatpush.msrb.mxu2 %v1326_v10  ;;  %410 = vmatpush.msra.mxu0 %v1293_v1 }
  0x25   :  { %260 = vmatpush.msrb.mxu1 %v1387_v25  ;;  %346 = vmatpush.msrb.mxu3 %v1361_v20 }
  0x26   :  { %327 = vmatpush.msrb.mxu2 %v1341_v15  ;;  %411 = vmatpush.msra.mxu0 %v1298_v2 }
  0x27   :  { %261 = vmatpush.msrb.mxu1 %v1395_v26  ;;  %347 = vmatpush.msrb.mxu3 %v1379_v24 }
  0x28   :  { %328 = vmatpush.msrb.mxu2 %v1353_v18  ;;  %412 = vmatpush.msra.mxu0 %v1304_v3 }
  0x29   :  { %430 = vmatpush.msra.mxu1 %v1315_v8  ;;  %348 = vmatpush.msrb.mxu3 %v1387_v25 }
  0x2a   :  { %329 = vmatpush.msrb.mxu2 %v1366_v21  ;;  %413 = vmatpush.msra.mxu0 %v1310_v6 }
  0x2b   :  { %431 = vmatpush.msra.mxu1 %v1321_v9  ;;  %349 = vmatpush.msrb.mxu3 %v1395_v26 }
  0x2c   :  { %498 = vmatpush.msra.mxu2 %v1293_v1  ;;  %414 = vmatpush.msra.mxu0 %v1326_v10 }
  0x2d   :  { %432 = vmatpush.msra.mxu1 %v1336_v13  ;;  %518 = vmatpush.msra.mxu3 %v1315_v8 }
  0x2e   :  { %499 = vmatpush.msra.mxu2 %v1298_v2  ;;  %415 = vmatpush.msra.mxu0 %v1341_v15 }
  0x2f   :  { %433 = vmatpush.msra.mxu1 %v1348_v17  ;;  %519 = vmatpush.msra.mxu3 %v1321_v9 }
  0x30   :  { %500 = vmatpush.msra.mxu2 %v1304_v3  ;;  %416 = vmatpush.msra.mxu0 %v1353_v18 }
  0x31   :  { %434 = vmatpush.msra.mxu1 %v1361_v20  ;;  %520 = vmatpush.msra.mxu3 %v1336_v13 }
  0x32   :  { %501 = vmatpush.msra.mxu2 %v1310_v6  ;;  %417 = vmatpush.msra.mxu0 %v1366_v21 }
  0x33   :  { %435 = vmatpush.msra.mxu1 %v1379_v24  ;;  %521 = vmatpush.msra.mxu3 %v1348_v17 }
  0x34   :  { %502 = vmatpush.msra.mxu2 %v1326_v10 }
  0x35   :  { %436 = vmatpush.msra.mxu1 %v1387_v25  ;;  %522 = vmatpush.msra.mxu3 %v1361_v20 }
  0x36   :  { %503 = vmatpush.msra.mxu2 %v1341_v15 }
  0x37   :  { %437 = vmatpush.msra.mxu1 %v1395_v26  ;;  %523 = vmatpush.msra.mxu3 %v1379_v24 }
  0x38   :  { %504 = vmatpush.msra.mxu2 %v1353_v18 }
  0x39   :  { %524 = vmatpush.msra.mxu3 %v1387_v25 }
  0x3a   :  { %505 = vmatpush.msra.mxu2 %v1366_v21 }
  0x3b   :  { %525 = vmatpush.msra.mxu3 %v1395_v26 }
  0x90   :  { %v98_v30 = vpop.f32.mrf.mxu0 }
  0x91   :  { %v1472_v32 = vadd.f32 %v98_v30, %v73_v29 }
  0x94   :  { %v118_v48 = vpop.f32.mrf.mxu1 }
  0x95   :  { %v1479_v53 = vadd.f32 %v118_v48, %v74_v47 }
  0x9c   :  { %v165_v33 = vpop.f32.mrf.mxu2 }
  0x9d   :  { %v166_v34 = vadd.f32 %v165_v33, %v1470_v31 }
  0x9f   :  { %v188_v35 = vadd.f32 %v166_v34, %v1472_v32  ;;  %v185_v43 = vpop.f32.mrf.mxu3 }
  0xa0   :  { %v186_v49 = vadd.f32 %v185_v43, %v1476_v41 }
  0xa1   :  { %v1059_v36 = vmul.f32 -1.442695, %v188_v35 }
  0xa3   :  { %1096 = vpow2.f32 %v1059_v36 }
  0xa9   :  { %v1097_v37 = vpop.eup %1096 }
  0xaa   :  { %v192_v38 = vadd.f32 1.0, %v1097_v37 }
  0xac   :  { %1098 = vrcp.f32 %v192_v38  ;;  %v204_v44 = vand.u32 2147483648, %v192_v38  ;;  %v202_v46 = vand.u32 2147483647, %v192_v38  ;;  %vm198_vm3 = vweird.f32 %v192_v38 }
  0xae   :  { %v205_v51 = vor.u32 1.1754944e-38, %v204_v44  ;;  %vm203_vm5 = vcmp.eq.f32.partialorder %v202_v46, 8.507059e+37 }
  0xb2   :  { %v1099_v39 = vpop.eup %1098 }
  0xb3   :  { %v194_v40 = vmul.f32 %v1099_v39, %v192_v38  ;;  %vm199_vm2 = vweird.f32 %v1099_v39 }
  0xb4   :  { %vm200_vm4 = vmor %vm198_vm3, %vm199_vm2 }
  0xb5   :  { %v195_v42 = vsub.f32 1.0, %v194_v40 }
  0xb7   :  { %v196_v45 = vmul.f32 %v1099_v39, %v195_v42 }
  0xb9   :  { %v197_v50 = vadd.f32 %v1099_v39, %v196_v45 }
  0xbb   :  { %v201_v52 = vsel %vm200_vm4, %v1099_v39, %v197_v50 }
  0xbc   :  { %v206_v54 = vsel %vm203_vm5, %v205_v51, %v201_v52 }
  0xbd   :  { %v208_v55 = vmul.f32 %v206_v54, %v186_v49 }
  0xbf   :  { %v209_v56 = vadd.f32 %v208_v55, %v1479_v53 }
  0xc1   :  { %1100 = vtanh.f32 %v209_v56 }
  0xc7   :  { %v1101_v57 = vpop.eup %1100 }
  0xc8   :  { %v211_v58 = vsub.f32 %v1374_v23, %v1101_v57 }
  0xca   :  { %v213_v59 = vperm.slane %v211_v58, 0 }
  0xcc   :  { %214 = vrot.lane.b32.xlu0 %v213_v59, %s1209_s3 }
 0x13e   :  { %v215_v60 = vpop.permute.xlu0 %214 }
 0x13f   :  { %v217_v61 = vmul.f32 %v215_v60, %v206_v54 }
 0x141   :  { %219 = vrot.lane.b32.xlu0 %v217_v61, %s1209_s3 }
 0x1b3   :  { %v220_v62 = vpop.permute.xlu0 %219 }
 0x1b4   :  { %v1485_v63 = vadd.f32 %v1101_v57, %v220_v62 }
 0x1b6   :  { %1060 = vmatmul.msk.f32.vlgmr.msrb.gmra.mxu0 %vm144_vm1, %v1485_v63  ;;  %1061 = vmatmul.msk.f32.vlgmr.msrb.gmra.mxu1 %vm144_vm1, %v1485_v63 }
 0x1b7   :  { %586 = vmatpush.msrb.mxu0 %v1293_v1  ;;  %606 = vmatpush.msrb.mxu1 %v1315_v8 }
 0x1b9   :  { %587 = vmatpush.msrb.mxu0 %v1298_v2  ;;  %607 = vmatpush.msrb.mxu1 %v1321_v9 }
 0x1bb   :  { %588 = vmatpush.msrb.mxu0 %v1304_v3  ;;  %608 = vmatpush.msrb.mxu1 %v1336_v13 }
 0x1bd   :  { %589 = vmatpush.msrb.mxu0 %v1310_v6  ;;  %609 = vmatpush.msrb.mxu1 %v1348_v17 }
 0x1bf   :  { %590 = vmatpush.msrb.mxu0 %v1326_v10  ;;  %610 = vmatpush.msrb.mxu1 %v1361_v20 }
 0x1c1   :  { %591 = vmatpush.msrb.mxu0 %v1341_v15  ;;  %611 = vmatpush.msrb.mxu1 %v1379_v24 }
 0x1c3   :  { %592 = vmatpush.msrb.mxu0 %v1353_v18  ;;  %612 = vmatpush.msrb.mxu1 %v1387_v25 }
 0x1c5   :  { %593 = vmatpush.msrb.mxu0 %v1366_v21  ;;  %613 = vmatpush.msrb.mxu1 %v1395_v26 }
 0x233   :  { %v243_v0 = vpop.f32.mrf.mxu0  ;;  %v263_v22 = vpop.f32.mrf.mxu1 }
 0x234   :  { %v244_v4 = vadd.f32 %v243_v0, %v1470_v31  ;;  %v264_v28 = vadd.f32 %v263_v22, %v1476_v41 }
 0x236   :  { %v267_v5 = vrot.slane %v244_v4, 7  ;;  %v290_v36 = vrot.slane %v264_v28, 7 }
 0x238   :  { %v269_v7 = vadd.f32 %v267_v5, %v1472_v32 }
 0x23a   :  { %v1062_v11 = vmul.f32 -1.442695, %v269_v7 }
 0x23c   :  { %1102 = vpow2.f32 %v1062_v11 }
 0x242   :  { %v1103_v12 = vpop.eup %1102 }
 0x243   :  { %v273_v14 = vadd.f32 1.0, %v1103_v12 }
 0x245   :  { %1104 = vrcp.f32 %v273_v14  ;;  %v285_v27 = vand.u32 2147483648, %v273_v14  ;;  %v283_v30 = vand.u32 2147483647, %v273_v14  ;;  %vm279_vm7 = vweird.f32 %v273_v14 }
 0x247   :  { %v286_v34 = vor.u32 1.1754944e-38, %v285_v27  ;;  %vm284_vm9 = vcmp.eq.f32.partialorder %v283_v30, 8.507059e+37 }
 0x24b   :  { %v1105_v16 = vpop.eup %1104 }
 0x24c   :  { %v275_v19 = vmul.f32 %v1105_v16, %v273_v14  ;;  %vm280_vm6 = vweird.f32 %v1105_v16 }
 0x24d   :  { %vm281_vm8 = vmor %vm279_vm7, %vm280_vm6 }
 0x24e   :  { %v276_v23 = vsub.f32 1.0, %v275_v19 }
 0x250   :  { %v277_v29 = vmul.f32 %v1105_v16, %v276_v23 }
 0x252   :  { %v278_v33 = vadd.f32 %v1105_v16, %v277_v29 }
 0x254   :  { %v282_v35 = vsel %vm281_vm8, %v1105_v16, %v278_v33 }
 0x255   :  { %v287_v37 = vsel %vm284_vm9, %v286_v34, %v282_v35 }
 0x256   :  { %v292_v38 = vmul.f32 %v290_v36, %v287_v37 }
 0x258   :  { %v293_v39 = vadd.f32 %v292_v38, %v1479_v53 }
 0x25a   :  { %1106 = vtanh.f32 %v293_v39 }
 0x260   :  { %v1107_v40 = vpop.eup %1106 }
 0x261   :  { %v296_v42 = vrot.slane %v1107_v40, 1 }
 0x263   :  { %v298_v43 = vsub.f32 %v1485_v63, %v296_v42 }
 0x265   :  { %v300_v44 = vrot.slane %v298_v43, 7 }
 0x267   :  { %301 = vrot.lane.b32.xlu1 %v300_v44, %s1209_s3 }
 0x2d9   :  { %v302_v45 = vpop.permute.xlu1 %301 }
 0x2da   :  { %v304_v46 = vmul.f32 %v302_v45, %v287_v37 }
 0x2dc   :  { %306 = vrot.lane.b32.xlu1 %v304_v46, %s1209_s3 }
 0x34e   :  { %v307_v47 = vpop.permute.xlu1 %306 }
 0x34f   :  { %v1514_v48 = vadd.f32 %v1107_v40, %v307_v47 }
 0x351   :  { %v311_v49 = vrot.slane %v1514_v48, 1 }
 0x353   :  { %1063 = vmatmul.msk.f32.vlgmr.msrb.gmra.mxu2 %vm144_vm1, %v311_v49  ;;  %1064 = vmatmul.msk.f32.vlgmr.msrb.gmra.mxu3 %vm144_vm1, %v311_v49 }
 0x354   :  { %674 = vmatpush.msrb.mxu2 %v1293_v1  ;;  %694 = vmatpush.msrb.mxu3 %v1315_v8 }
 0x356   :  { %675 = vmatpush.msrb.mxu2 %v1298_v2  ;;  %695 = vmatpush.msrb.mxu3 %v1321_v9 }
 0x358   :  { %676 = vmatpush.msrb.mxu2 %v1304_v3  ;;  %696 = vmatpush.msrb.mxu3 %v1336_v13 }
 0x35a   :  { %677 = vmatpush.msrb.mxu2 %v1310_v6  ;;  %697 = vmatpush.msrb.mxu3 %v1348_v17 }
 0x35c   :  { %678 = vmatpush.msrb.mxu2 %v1326_v10  ;;  %698 = vmatpush.msrb.mxu3 %v1361_v20 }
 0x35e   :  { %679 = vmatpush.msrb.mxu2 %v1341_v15  ;;  %699 = vmatpush.msrb.mxu3 %v1379_v24 }
 0x360   :  { %680 = vmatpush.msrb.mxu2 %v1353_v18  ;;  %700 = vmatpush.msrb.mxu3 %v1387_v25 }
 0x362   :  { %681 = vmatpush.msrb.mxu2 %v1366_v21  ;;  %701 = vmatpush.msrb.mxu3 %v1395_v26 }
 0x3d6   :  { %v331_v50 = vpop.f32.mrf.mxu2  ;;  %v351_v60 = vpop.f32.mrf.mxu3 }
 0x3d7   :  { %v332_v51 = vadd.f32 %v331_v50, %v1470_v31  ;;  %v352_v0 = vadd.f32 %v351_v60, %v1476_v41 }
 0x3d9   :  { %v355_v52 = vrot.slane %v332_v51, 6  ;;  %v378_v14 = vrot.slane %v352_v0, 6 }
 0x3db   :  { %v357_v54 = vadd.f32 %v355_v52, %v1472_v32 }
 0x3dd   :  { %v1065_v55 = vmul.f32 -1.442695, %v357_v54 }
 0x3df   :  { %1108 = vpow2.f32 %v1065_v55 }
 0x3e5   :  { %v1109_v56 = vpop.eup %1108 }
 0x3e6   :  { %v361_v57 = vadd.f32 1.0, %v1109_v56 }
 0x3e8   :  { %1110 = vrcp.f32 %v361_v57  ;;  %v373_v62 = vand.u32 2147483648, %v361_v57  ;;  %v371_v5 = vand.u32 2147483647, %v361_v57  ;;  %vm367_vm11 = vweird.f32 %v361_v57 }
 0x3ea   :  { %v374_v11 = vor.u32 1.1754944e-38, %v373_v62  ;;  %vm372_vm13 = vcmp.eq.f32.partialorder %v371_v5, 8.507059e+37 }
 0x3ee   :  { %v1111_v58 = vpop.eup %1110 }
 0x3ef   :  { %v363_v59 = vmul.f32 %v1111_v58, %v361_v57  ;;  %vm368_vm10 = vweird.f32 %v1111_v58 }
 0x3f0   :  { %vm369_vm12 = vmor %vm367_vm11, %vm368_vm10 }
 0x3f1   :  { %v364_v61 = vsub.f32 1.0, %v363_v59 }
 0x3f3   :  { %v365_v4 = vmul.f32 %v1111_v58, %v364_v61 }
 0x3f5   :  { %v366_v7 = vadd.f32 %v1111_v58, %v365_v4 }
 0x3f7   :  { %v370_v12 = vsel %vm369_vm12, %v1111_v58, %v366_v7 }
 0x3f8   :  { %v375_v16 = vsel %vm372_vm13, %v374_v11, %v370_v12 }
 0x3f9   :  { %v380_v19 = vmul.f32 %v378_v14, %v375_v16 }
 0x3fb   :  { %v381_v22 = vadd.f32 %v380_v19, %v1479_v53 }
 0x3fd   :  { %1112 = vtanh.f32 %v381_v22 }
 0x403   :  { %v1113_v23 = vpop.eup %1112 }
 0x404   :  { %v384_v27 = vrot.slane %v1113_v23, 1 }
 0x406   :  { %v386_v28 = vsub.f32 %v1514_v48, %v384_v27 }
 0x408   :  { %v388_v29 = vrot.slane %v386_v28, 7 }
 0x40a   :  { %389 = vrot.lane.b32.xlu2 %v388_v29, %s1209_s3 }
 0x464   :  { %v390_v30 = vpop.permute.xlu2 %389 }
 0x465   :  { %v392_v33 = vmul.f32 %v390_v30, %v375_v16 }
 0x467   :  { %394 = vrot.lane.b32.xlu2 %v392_v33, %s1209_s3 }
 0x4c1   :  { %v395_v34 = vpop.permute.xlu2 %394 }
 0x4c2   :  { %v1542_v35 = vadd.f32 %v1113_v23, %v395_v34 }
 0x4c4   :  { %v399_v36 = vrot.slane %v1542_v35, 2 }
 0x4c6   :  { %1066 = vmatmul.msk.f32.vlgmr.msra.gmra.mxu0 %vm144_vm1, %v399_v36  ;;  %1067 = vmatmul.msk.f32.vlgmr.msra.gmra.mxu1 %vm144_vm1, %v399_v36 }
 0x4c7   :  { %762 = vmatpush.msra.mxu0 %v1293_v1  ;;  %782 = vmatpush.msra.mxu1 %v1315_v8 }
 0x4c9   :  { %763 = vmatpush.msra.mxu0 %v1298_v2  ;;  %783 = vmatpush.msra.mxu1 %v1321_v9 }
 0x4cb   :  { %764 = vmatpush.msra.mxu0 %v1304_v3  ;;  %784 = vmatpush.msra.mxu1 %v1336_v13 }
 0x4cd   :  { %765 = vmatpush.msra.mxu0 %v1310_v6  ;;  %785 = vmatpush.msra.mxu1 %v1348_v17 }
 0x4cf   :  { %766 = vmatpush.msra.mxu0 %v1326_v10  ;;  %786 = vmatpush.msra.mxu1 %v1361_v20 }
 0x4d1   :  { %767 = vmatpush.msra.mxu0 %v1341_v15  ;;  %787 = vmatpush.msra.mxu1 %v1379_v24 }
 0x4d3   :  { %768 = vmatpush.msra.mxu0 %v1353_v18  ;;  %788 = vmatpush.msra.mxu1 %v1387_v25 }
 0x4d5   :  { %769 = vmatpush.msra.mxu0 %v1366_v21  ;;  %789 = vmatpush.msra.mxu1 %v1395_v26 }
 0x543   :  { %v419_v1 = vpop.f32.mrf.mxu0  ;;  %v439_v17 = vpop.f32.mrf.mxu1 }
 0x544   :  { %v420_v2 = vadd.f32 %v419_v1, %v1470_v31  ;;  %v440_v21 = vadd.f32 %v439_v17, %v1476_v41 }
 0x546   :  { %v443_v3 = vrot.slane %v420_v2, 5  ;;  %v466_v39 = vrot.slane %v440_v21, 5 }
 0x548   :  { %v445_v6 = vadd.f32 %v443_v3, %v1472_v32 }
 0x54a   :  { %v1068_v8 = vmul.f32 -1.442695, %v445_v6 }
 0x54c   :  { %1114 = vpow2.f32 %v1068_v8 }
 0x552   :  { %v1115_v9 = vpop.eup %1114 }
 0x553   :  { %v449_v10 = vadd.f32 1.0, %v1115_v9 }
 0x555   :  { %1116 = vrcp.f32 %v449_v10  ;;  %v461_v20 = vand.u32 2147483648, %v449_v10  ;;  %v459_v25 = vand.u32 2147483647, %v449_v10  ;;  %vm455_vm15 = vweird.f32 %v449_v10 }
 0x557   :  { %v462_v37 = vor.u32 1.1754944e-38, %v461_v20  ;;  %vm460_vm3 = vcmp.eq.f32.partialorder %v459_v25, 8.507059e+37 }
 0x55b   :  { %v1117_v13 = vpop.eup %1116 }
 0x55c   :  { %v451_v15 = vmul.f32 %v1117_v13, %v449_v10  ;;  %vm456_vm14 = vweird.f32 %v1117_v13 }
 0x55d   :  { %vm457_vm2 = vmor %vm455_vm15, %vm456_vm14 }
 0x55e   :  { %v452_v18 = vsub.f32 1.0, %v451_v15 }
 0x560   :  { %v453_v24 = vmul.f32 %v1117_v13, %v452_v18 }
 0x562   :  { %v454_v26 = vadd.f32 %v1117_v13, %v453_v24 }
 0x564   :  { %v458_v38 = vsel %vm457_vm2, %v1117_v13, %v454_v26 }
 0x565   :  { %v463_v40 = vsel %vm460_vm3, %v462_v37, %v458_v38 }
 0x566   :  { %v468_v42 = vmul.f32 %v466_v39, %v463_v40 }
 0x568   :  { %v469_v43 = vadd.f32 %v468_v42, %v1479_v53 }
 0x56a   :  { %1118 = vtanh.f32 %v469_v43 }
 0x570   :  { %v1119_v44 = vpop.eup %1118 }
 0x571   :  { %v472_v45 = vrot.slane %v1119_v44, 1 }
 0x573   :  { %v474_v46 = vsub.f32 %v1542_v35, %v472_v45 }
 0x575   :  { %v476_v47 = vrot.slane %v474_v46, 7 }
 0x577   :  { %477 = vrot.lane.b32.xlu0 %v476_v47, %s1209_s3 }
 0x5e9   :  { %v478_v49 = vpop.permute.xlu0 %477 }
 0x5ea   :  { %v480_v50 = vmul.f32 %v478_v49, %v463_v40 }
 0x5ec   :  { %482 = vrot.lane.b32.xlu1 %v480_v50, %s1209_s3 }
 0x65e   :  { %v483_v51 = vpop.permute.xlu1 %482 }
 0x65f   :  { %v1570_v52 = vadd.f32 %v1119_v44, %v483_v51 }
 0x661   :  { %v487_v54 = vrot.slane %v1570_v52, 3 }
 0x663   :  { %1069 = vmatmul.msk.f32.vlgmr.msra.gmra.mxu2 %vm144_vm1, %v487_v54  ;;  %1070 = vmatmul.msk.f32.vlgmr.msra.gmra.mxu3 %vm144_vm1, %v487_v54 }
 0x6e6   :  { %v507_v55 = vpop.f32.mrf.mxu2  ;;  %v527_v4 = vpop.f32.mrf.mxu3 }
 0x6e7   :  { %v508_v56 = vadd.f32 %v507_v55, %v1470_v31  ;;  %v528_v11 = vadd.f32 %v527_v4, %v1476_v41 }
 0x6e9   :  { %v531_v57 = vrot.slane %v508_v56, 4  ;;  %v554_v23 = vrot.slane %v528_v11, 4 }
 0x6eb   :  { %v533_v58 = vadd.f32 %v531_v57, %v1472_v32 }
 0x6ed   :  { %v1071_v59 = vmul.f32 -1.442695, %v533_v58 }
 0x6ef   :  { %1120 = vpow2.f32 %v1071_v59 }
 0x6f5   :  { %v1121_v60 = vpop.eup %1120 }
 0x6f6   :  { %v537_v61 = vadd.f32 1.0, %v1121_v60 }
 0x6f8   :  { %1122 = vrcp.f32 %v537_v61  ;;  %v549_v7 = vand.u32 2147483648, %v537_v61  ;;  %v547_v14 = vand.u32 2147483647, %v537_v61  ;;  %vm543_vm5 = vweird.f32 %v537_v61 }
 0x6fa   :  { %v550_v19 = vor.u32 1.1754944e-38, %v549_v7  ;;  %vm548_vm7 = vcmp.eq.f32.partialorder %v547_v14, 8.507059e+37 }
 0x6fe   :  { %v1123_v62 = vpop.eup %1122 }
 0x6ff   :  { %v539_v0 = vmul.f32 %v1123_v62, %v537_v61  ;;  %vm544_vm4 = vweird.f32 %v1123_v62 }
 0x700   :  { %vm545_vm6 = vmor %vm543_vm5, %vm544_vm4 }
 0x701   :  { %v540_v5 = vsub.f32 1.0, %v539_v0 }
 0x703   :  { %v541_v12 = vmul.f32 %v1123_v62, %v540_v5 }
 0x705   :  { %v542_v16 = vadd.f32 %v1123_v62, %v541_v12 }
 0x707   :  { %v546_v22 = vsel %vm545_vm6, %v1123_v62, %v542_v16  ;;  %vm840_vm6 = vcmask 1040384  }
 0x708   :  { %v551_v27 = vsel %vm548_vm7, %v550_v19, %v546_v22  ;;  %vm842_vm7 = vcmask 1041408  }
 0x709   :  { %v556_v28 = vmul.f32 %v554_v23, %v551_v27 }
 0x70b   :  { %v557_v29 = vadd.f32 %v556_v28, %v1479_v53 }
 0x70d   :  { %1124 = vtanh.f32 %v557_v29 }
 0x713   :  { %v1125_v30 = vpop.eup %1124 }
 0x714   :  { %v560_v33 = vrot.slane %v1125_v30, 1 }
 0x716   :  { %v562_v34 = vsub.f32 %v1570_v52, %v560_v33 }
 0x718   :  { %v564_v36 = vrot.slane %v562_v34, 7 }
 0x71a   :  { %565 = vrot.lane.b32.xlu2 %v564_v36, %s1209_s3 }
 0x774   :  { %v566_v1 = vpop.permute.xlu2 %565 }
 0x775   :  { %v568_v2 = vmul.f32 %v566_v1, %v551_v27 }
 0x777   :  { %570 = vrot.lane.b32.xlu0 %v568_v2, %s1209_s3 }
 0x7e9   :  { %v571_v3 = vpop.permute.xlu0 %570 }
 0x7ea   :  { %v1582_v6 = vadd.f32 %v1125_v30, %v571_v3 }
 0x7ec   :  { %v575_v8 = vrot.slane %v1582_v6, 4 }
 0x7ee   :  { %1072 = vmatmul.msk.f32.vlgmr.msrb.gmra.mxu0 %vm144_vm1, %v575_v8  ;;  %1073 = vmatmul.msk.f32.vlgmr.msrb.gmra.mxu1 %vm144_vm1, %v575_v8 }
 0x86b   :  { %v595_v9 = vpop.f32.mrf.mxu0  ;;  %v615_v25 = vpop.f32.mrf.mxu1 }
 0x86c   :  { %v596_v10 = vadd.f32 %v595_v9, %v1470_v31  ;;  %v616_v38 = vadd.f32 %v615_v25, %v1476_v41 }
 0x86e   :  { %v619_v13 = vrot.slane %v596_v10, 3  ;;  %v642_v45 = vrot.slane %v616_v38, 3 }
 0x870   :  { %v621_v15 = vadd.f32 %v619_v13, %v1472_v32 }
 0x872   :  { %v1074_v17 = vmul.f32 -1.442695, %v621_v15 }
 0x874   :  { %1126 = vpow2.f32 %v1074_v17 }
 0x87a   :  { %v1127_v18 = vpop.eup %1126 }
 0x87b   :  { %v625_v20 = vadd.f32 1.0, %v1127_v18 }
 0x87d   :  { %1128 = vrcp.f32 %v625_v20  ;;  %v637_v37 = vand.u32 2147483648, %v625_v20  ;;  %v635_v40 = vand.u32 2147483647, %v625_v20  ;;  %vm631_vm9 = vweird.f32 %v625_v20 }
 0x87f   :  { %v638_v43 = vor.u32 1.1754944e-38, %v637_v37  ;;  %vm636_vm11 = vcmp.eq.f32.partialorder %v635_v40, 8.507059e+37 }
 0x883   :  { %v1129_v21 = vpop.eup %1128 }
 0x884   :  { %v627_v24 = vmul.f32 %v1129_v21, %v625_v20  ;;  %vm632_vm8 = vweird.f32 %v1129_v21 }
 0x885   :  { %vm633_vm10 = vmor %vm631_vm9, %vm632_vm8  ;;  %vm844_vm8 = vcmask 1042432   ;;  %vm846_vm9 = vcmask 1043456  }
 0x886   :  { %v628_v26 = vsub.f32 1.0, %v627_v24 }
 0x888   :  { %v629_v39 = vmul.f32 %v1129_v21, %v628_v26 }
 0x88a   :  { %v630_v42 = vadd.f32 %v1129_v21, %v629_v39 }
 0x88c   :  { %v634_v44 = vsel %vm633_vm10, %v1129_v21, %v630_v42  ;;  %vm848_vm10 = vcmask 1044480  }
 0x88d   :  { %v639_v46 = vsel %vm636_vm11, %v638_v43, %v634_v44  ;;  %vm850_vm11 = vcmask 1045504  }
 0x88e   :  { %v644_v47 = vmul.f32 %v642_v45, %v639_v46 }
 0x890   :  { %v645_v49 = vadd.f32 %v644_v47, %v1479_v53 }
 0x892   :  { %1130 = vtanh.f32 %v645_v49 }
 0x898   :  { %v1131_v50 = vpop.eup %1130 }
 0x899   :  { %v648_v51 = vrot.slane %v1131_v50, 1 }
 0x89b   :  { %v650_v54 = vsub.f32 %v1582_v6, %v648_v51 }
 0x89d   :  { %v652_v55 = vrot.slane %v650_v54, 7 }
 0x89f   :  { %653 = vrot.lane.b32.xlu1 %v652_v55, %s1209_s3 }
 0x911   :  { %v654_v56 = vpop.permute.xlu1 %653 }
 0x912   :  { %v656_v57 = vmul.f32 %v654_v56, %v639_v46 }
 0x914   :  { %658 = vrot.lane.b32.xlu2 %v656_v57, %s1209_s3 }
 0x96e   :  { %v659_v58 = vpop.permute.xlu2 %658 }
 0x96f   :  { %v1594_v59 = vadd.f32 %v1131_v50, %v659_v58 }
 0x971   :  { %v663_v60 = vrot.slane %v1594_v59, 5 }
 0x973   :  { %1075 = vmatmul.msk.f32.vlgmr.msrb.gmra.mxu2 %vm144_vm1, %v663_v60  ;;  %1076 = vmatmul.msk.f32.vlgmr.msrb.gmra.mxu3 %vm144_vm1, %v663_v60 }
 0x9f6   :  { %v683_v61 = vpop.f32.mrf.mxu2  ;;  %v703_v16 = vpop.f32.mrf.mxu3 }
 0x9f7   :  { %v684_v62 = vadd.f32 %v683_v61, %v1470_v31  ;;  %v704_v23 = vadd.f32 %v703_v16, %v1476_v41  ;;  %v892_v16 = vld [vmem:[%s1688_s7 + $0x20] sm:$0xff] }
 0x9f9   :  { %v707_v0 = vrot.slane %v684_v62, 2  ;;  %v730_v34 = vrot.slane %v704_v23, 2  ;;  %v889_v23 = vld [vmem:[%s1688_s7 + $0x8] sm:$0xff] }
 0x9fb   :  { %v709_v4 = vadd.f32 %v707_v0, %v1472_v32  ;;  %v841_v0 = vsel %vm840_vm6, %v1485_v63, %v1514_v48  ;;  %v854_v48 = vld [vmem:[%s1687_s6] sm:$0xff]  ;;  %vm1021_vm6 = vcmask 32768  }
 0x9fd   :  { %v1077_v5 = vmul.f32 -1.442695, %v709_v4 }
 0x9ff   :  { %1132 = vpow2.f32 %v1077_v5 }
 0xa05   :  { %v1133_v7 = vpop.eup %1132 }
 0xa06   :  { %v713_v11 = vadd.f32 1.0, %v1133_v7 }
 0xa08   :  { %1134 = vrcp.f32 %v713_v11  ;;  %v725_v22 = vand.u32 2147483648, %v713_v11  ;;  %v723_v28 = vand.u32 2147483647, %v713_v11  ;;  %vm719_vm13 = vweird.f32 %v713_v11 }
 0xa0a   :  { %v726_v30 = vor.u32 1.1754944e-38, %v725_v22  ;;  %vm724_vm15 = vcmp.eq.f32.partialorder %v723_v28, 8.507059e+37  ;;  %v890_v22 = vld [vmem:[%s1688_s7 + $0x10] sm:$0xff]  ;;  %v888_v28 = vld [vmem:[%s1688_s7] sm:$0xff] }
 0xa0e   :  { %v1135_v12 = vpop.eup %1134 }
 0xa0f   :  { %v715_v14 = vmul.f32 %v1135_v12, %v713_v11  ;;  %vm720_vm12 = vweird.f32 %v1135_v12 }
 0xa10   :  { %vm721_vm14 = vmor %vm719_vm13, %vm720_vm12  ;;  %vm838_vm12 = vcmask 523271   ;;  %vm852_vm13 = vcmask 1046528  }
 0xa11   :  { %v716_v19 = vsub.f32 1.0, %v715_v14 }
 0xa13   :  { %v717_v27 = vmul.f32 %v1135_v12, %v716_v19  ;;  %v891_v19 = vld [vmem:[%s1688_s7 + $0x18] sm:$0xff] }
 0xa15   :  { %v718_v29 = vadd.f32 %v1135_v12, %v717_v27 }
 0xa17   :  { %v722_v33 = vsel %vm721_vm14, %v1135_v12, %v718_v29  ;;  %vm859_vm14 = vcmask 64512  }
 0xa18   :  { %v727_v36 = vsel %vm724_vm15, %v726_v30, %v722_v33  ;;  %v928_v33 = vld [vmem:[%s1690_s9 + $0x18] sm:$0xff] }
 0xa19   :  { %v732_v1 = vmul.f32 %v730_v34, %v727_v36  ;;  %948 = vmatpush.msrb.mxu0 %v928_v33  ;;  %v927_v34 = vld [vmem:[%s1690_s9 + $0x10] sm:$0xff] }
 0xa1b   :  { %v733_v2 = vadd.f32 %v732_v1, %v1479_v53  ;;  %949 = vmatpush.msrb.mxu0 %v927_v34  ;;  %v925_v1 = vld [vmem:[%s1690_s9] sm:$0xff] }
 0xa1d   :  { %1136 = vtanh.f32 %v733_v2  ;;  %v1093_v2 = vld [vmem:[%s1689_s8] ss:$0 sm:$0xff] }
 0xa23   :  { %v1137_v3 = vpop.eup %1136 }
 0xa24   :  { %v736_v8 = vrot.slane %v1137_v3, 1 }
 0xa26   :  { %v738_v9 = vsub.f32 %v1594_v59, %v736_v8 }
 0xa28   :  { %v740_v10 = vrot.slane %v738_v9, 7 }
 0xa2a   :  { %741 = vrot.lane.b32.xlu0 %v740_v10, %s1209_s3  ;;  %v1094_v10 = vld [vmem:[#allocation2] ss:$0 sm:$0xff] }
 0xa9c   :  { %v742_v13 = vpop.permute.xlu0 %741 }
 0xa9d   :  { %v744_v15 = vmul.f32 %v742_v13, %v727_v36  ;;  %v926_v36 = vld [vmem:[%s1690_s9 + $0x8] sm:$0xff] }
 0xa9e   :  { %950 = vmatpush.msrb.mxu0 %v926_v36 }
 0xa9f   :  { %746 = vrot.lane.b32.xlu1 %v744_v15, %s1209_s3 }
 0xaa0   :  { %951 = vmatpush.msrb.mxu0 %v925_v1 }
 0xb11   :  { %v747_v17 = vpop.permute.xlu1 %746 }
 0xb12   :  { %v749_v18 = vadd.f32 %v1137_v3, %v747_v17 }
 0xb14   :  { %v751_v20 = vrot.slane %v749_v18, 6 }
 0xb16   :  { %1078 = vmatmul.msk.f32.vlgmr.msra.gmra.mxu0 %vm144_vm1, %v751_v20  ;;  %1079 = vmatmul.msk.f32.vlgmr.msra.gmra.mxu1 %vm144_vm1, %v751_v20 }
 0xb93   :  { %v771_v21 = vpop.f32.mrf.mxu0  ;;  %v791_v43 = vpop.f32.mrf.mxu1 }
 0xb94   :  { %v772_v24 = vadd.f32 %v771_v21, %v1470_v31  ;;  %v792_v46 = vadd.f32 %v791_v43, %v1476_v41  ;;  %v1095_v43 = vld [vmem:[%s1692_s11] ss:$0 sm:$0xff]  ;;  %s1213_s11 = smov [#allocation6]  }
 0xb95   :  { %s1039_s19 = sshll.u32 %s1213_s11, 4  ;;  %s1040_s19 = int_to_ptr.vmem [resolvable:$true] %s1039_s19 }
 0xb96   :  { %v795_v25 = vrot.slane %v772_v24, 1  ;;  %v818_v51 = vrot.slane %v792_v46, 1  ;;  %v1212_v24 = vmov 0  }
 0xb97   :  { %1092 = vset.pattern.permute.xlu0 %v1212_v24 }
 0xb98   :  { %v797_v26 = vadd.f32 %v795_v25, %v1472_v32 }
 0xb9a   :  { %v1080_v37 = vmul.f32 -1.442695, %v797_v26 }
 0xb9c   :  { %1138 = vpow2.f32 %v1080_v37 }
 0xba2   :  { %v1139_v38 = vpop.eup %1138 }
 0xba3   :  { %v801_v39 = vadd.f32 1.0, %v1139_v38 }
 0xba5   :  { %1140 = vrcp.f32 %v801_v39  ;;  %v813_v45 = vand.u32 2147483648, %v801_v39  ;;  %v811_v49 = vand.u32 2147483647, %v801_v39  ;;  %vm807_vm3 = vweird.f32 %v801_v39 }
 0xba7   :  { %v814_v31 = vor.u32 1.1754944e-38, %v813_v45  ;;  %vm812_vm5 = vcmp.eq.f32.partialorder %v811_v49, 8.507059e+37 }
 0xbab   :  { %v1141_v40 = vpop.eup %1140 }
 0xbac   :  { %v803_v42 = vmul.f32 %v1141_v40, %v801_v39  ;;  %vm808_vm2 = vweird.f32 %v1141_v40 }
 0xbad   :  { %vm809_vm4 = vmor %vm807_vm3, %vm808_vm2 }
 0xbae   :  { %v804_v44 = vsub.f32 1.0, %v803_v42 }
 0xbb0   :  { %v805_v47 = vmul.f32 %v1141_v40, %v804_v44 }
 0xbb2   :  { %v806_v50 = vadd.f32 %v1141_v40, %v805_v47 }
 0xbb4   :  { %v810_v32 = vsel %vm809_vm4, %v1141_v40, %v806_v50  ;;  %vm995_vm4 = vcmask 302336  }
 0xbb5   :  { %v815_v54 = vsel %vm812_vm5, %v814_v31, %v810_v32  ;;  %vm1010_vm5 = vcmask 295168  }
 0xbb6   :  { %v820_v55 = vmul.f32 %v818_v51, %v815_v54 }
 0xbb8   :  { %v821_v56 = vadd.f32 %v820_v55, %v1479_v53  ;;  %v843_v53 = vsel %vm842_vm7, %v841_v0, %v1542_v35 }
 0xbb9   :  { %v845_v4 = vsel %vm844_vm8, %v843_v53, %v1570_v52  ;;  %v895_v52 = vld [vmem:[%s1688_s7 + $0x38] sm:$0xff] }
 0xbba   :  { %1142 = vtanh.f32 %v821_v56  ;;  %v847_v5 = vsel %vm846_vm9, %v845_v4, %v1582_v6  ;;  %v894_v6 = vld [vmem:[%s1688_s7 + $0x30] sm:$0xff]  ;;  %907 = vmatpush.msra.mxu3 %v895_v52 }
 0xbbb   :  { %v849_v11 = vsel %vm848_vm10, %v847_v5, %v1594_v59  ;;  %v893_v59 = vld [vmem:[%s1688_s7 + $0x28] sm:$0xff] }
 0xbbc   :  { %v851_v14 = vsel %vm850_vm11, %v849_v11, %v749_v18  ;;  %908 = vmatpush.msra.mxu3 %v894_v6 }
 0xbbe   :  { %909 = vmatpush.msra.mxu3 %v893_v59 }
 0xbc0   :  { %v1143_v57 = vpop.eup %1142  ;;  %910 = vmatpush.msra.mxu3 %v892_v16 }
 0xbc1   :  { %v824_v58 = vrot.slane %v1143_v57, 1 }
 0xbc2   :  { %911 = vmatpush.msra.mxu3 %v891_v19 }
 0xbc3   :  { %v826_v60 = vsub.f32 %v749_v18, %v824_v58 }
 0xbc4   :  { %912 = vmatpush.msra.mxu3 %v890_v22 }
 0xbc5   :  { %v828_v61 = vrot.slane %v826_v60, 7 }
 0xbc6   :  { %913 = vmatpush.msra.mxu3 %v889_v23 }
 0xbc7   :  { %829 = vrot.lane.b32.xlu2 %v828_v61, %s1209_s3 }
 0xbc8   :  { %914 = vmatpush.msra.mxu3 %v888_v28 }
 0xc21   :  { %v830_v41 = vpop.permute.xlu2 %829 }
 0xc22   :  { %v832_v62 = vmul.f32 %v830_v41, %v815_v54 }
 0xc24   :  { %834 = vrot.lane.b32.xlu0 %v832_v62, %s1209_s3 }
 0xc96   :  { %v835_v7 = vpop.permute.xlu0 %834 }
 0xc97   :  { %v837_v12 = vadd.f32 %v1143_v57, %v835_v7 }
 0xc99   :  { %839 = vst.msk [vmem:[%s1694_s13 - $0x7] sm:$0x80] %vm838_vm12, %v837_v12  ;;  %v853_v63 = vsel %vm852_vm13, %v851_v14, %v837_v12  ;;  %s1041_s13 = sshll.u32 %s1693_s12, 4  ;;  %s1042_s13 = int_to_ptr.hbm [resolvable:$true] %s1041_s13 }
 0xc9a   :  { %856 = vrot.lane.b32.xlu1 %v853_v63, %s1210_s17 }
 0xca2   :  { %1006 = vrot.lane.b32.xlu1 %v1095_v43, %s1211_s1 }
 0xd0c   :  { %v857_v35 = vpop.permute.xlu1 %856 }
 0xd0d   :  { %878 = vmatpush.msra.mxu2 %v857_v35 }
 0xd0e   :  { %1081 = vmatmul.msk.f32.vlgmr.msra.gmra.mxu2 %vm859_vm14, %v854_v48 }
 0xd14   :  { %v1007_v14 = vpop.permute.xlu1 %1006 }
 0xd91   :  { %v880_v27 = vpop.f32.mrf.mxu2 }
 0xd92   :  { %884 = vrot.lane.b32.xlu2 %v880_v27, %s1211_s1 }
 0xdec   :  { %v885_v29 = vpop.permute.xlu2 %884 }
 0xded   :  { %v887_v30 = vsel %vm77_vm0, %v853_v63, %v885_v29 }
 0xdee   :  { %1082 = vmatmul.msk.f32.vlgmr.msra.gmra.mxu3 %vm144_vm1, %v887_v30  ;;  %vm956_vm1 = vcmask 7168  }
 0xe71   :  { %v916_v3 = vpop.f32.mrf.mxu3 }
 0xe72   :  { %v923_v8 = vadd.f32 %v1093_v2, %v916_v3 }
 0xe74   :  { %1144 = vtanh.f32 %v923_v8 }
 0xe7a   :  { %v1145_v9 = vpop.eup %1144 }
 0xe7b   :  { %1083 = vmatmul.msk.f32.vlgmr.msrb.gmra.mxu0 %vm77_vm0, %v1145_v9 }
 0xef8   :  { %v953_v13 = vpop.f32.mrf.mxu0 }
 0xef9   :  { %v954_v15 = vadd.f32 %v1094_v10, %v953_v13 }
 0xefb   :  { %v957_v17 = vsel %vm956_vm1, %v954_v15, -inf }
 0xefc   :  { %v958_v18 = vrot.slane %v957_v17, 4 }
 0xefe   :  { %v959_v20 = vmax.f32 %v957_v17, %v958_v18 }
 0xf00   :  { %v960_v21 = vrot.slane %v959_v20, 2 }
 0xf02   :  { %v961_v25 = vmax.f32 %v959_v20, %v960_v21 }
 0xf04   :  { %v962_v26 = vrot.slane %v961_v25, 1 }
 0xf06   :  { %v963_v37 = vmax.f32 %v961_v25, %v962_v26 }
 0xf08   :  { %v964_v38 = vsub.f32 %v954_v15, %v963_v37 }
 0xf0a   :  { %v965_v39 = vmul.f32 1.442695, %v964_v38 }
 0xf0c   :  { %1146 = vpow2.f32 %v965_v39 }
 0xf12   :  { %v1147_v40 = vpop.eup %1146 }
 0xf13   :  { %v967_v42 = vsel %vm956_vm1, %v1147_v40, 0.0 }
 0xf14   :  { %v968_v44 = vrot.slane %v967_v42, 4 }
 0xf16   :  { %v969_v45 = vadd.f32 %v968_v44, %v967_v42 }
 0xf18   :  { %v970_v46 = vrot.slane %v969_v45, 2 }
 0xf1a   :  { %v971_v47 = vadd.f32 %v970_v46, %v969_v45 }
 0xf1c   :  { %v972_v49 = vrot.slane %v971_v47, 1 }
 0xf1e   :  { %v973_v50 = vadd.f32 %v972_v49, %v971_v47 }
 0xf20   :  { %1148 = vrcp.f32 %v973_v50  ;;  %v985_v54 = vand.u32 2147483648, %v973_v50  ;;  %v983_v56 = vand.u32 2147483647, %v973_v50  ;;  %vm979_vm15 = vweird.f32 %v973_v50 }
 0xf22   :  { %v986_v58 = vor.u32 1.1754944e-38, %v985_v54  ;;  %vm984_vm3 = vcmp.eq.f32.partialorder %v983_v56, 8.507059e+37 }
 0xf26   :  { %v1149_v31 = vpop.eup %1148 }
 0xf27   :  { %v975_v32 = vmul.f32 %v1149_v31, %v973_v50  ;;  %vm980_vm0 = vweird.f32 %v1149_v31 }
 0xf28   :  { %vm981_vm2 = vmor %vm979_vm15, %vm980_vm0 }
 0xf29   :  { %v976_v51 = vsub.f32 1.0, %v975_v32 }
 0xf2b   :  { %v977_v55 = vmul.f32 %v1149_v31, %v976_v51 }
 0xf2d   :  { %v978_v57 = vadd.f32 %v1149_v31, %v977_v55 }
 0xf2f   :  { %v982_v60 = vsel %vm981_vm2, %v1149_v31, %v978_v57 }
 0xf30   :  { %v987_v61 = vsel %vm984_vm3, %v986_v58, %v982_v60 }
 0xf31   :  { %v988_v41 = vmul.f32 %v1147_v40, %v987_v61 }
 0xf33   :  { %991 = vperm.xlu0 %1092, %v988_v41  }
 0xfa5   :  { %v992_v62 = vpop.permute.xlu0 %991 }
 0xfa6   :  { %v994_v0 = vmul.f32 %v992_v62, %v916_v3 }
 0xfa8   :  { %v996_v53 = vsel %vm995_vm4, %v994_v0, 0.0 }
 0xfa9   :  { %v997_v4 = vrot.slane %v996_v53, 4 }
 0xfab   :  { %v998_v5 = vadd.f32 %v997_v4, %v996_v53 }
 0xfad   :  { %v999_v7 = vrot.slane %v998_v5, 2 }
 0xfaf   :  { %v1000_v11 = vadd.f32 %v999_v7, %v998_v5 }
 0xfb1   :  { %v1001_v12 = vrot.slane %v1000_v11, 1 }
 0xfb3   :  { %v1002_v63 = vadd.f32 %v1001_v12, %v1000_v11 }
 0xfb5   :  { %v1009_v48 = vadd.f32 %v1007_v14, %v1002_v63 }
 0xfb7   :  { %v1011_v35 = vsel %vm1010_vm5, %v1009_v48, -inf }
 0xfb8   :  { %1012 = vmax.xlane.f32.xlu2 %v1011_v35 }
0x102b   :  { %v1013_v52 = vpop.xlane.xlu2 %1012 }
0x102c   :  { %v1014_v6 = vsub.f32 %v1009_v48, %v1013_v52 }
0x102e   :  { %v1015_v59 = vmul.f32 1.442695, %v1014_v6 }
0x1030   :  { %1150 = vpow2.f32 %v1015_v59 }
0x1036   :  { %v1151_v16 = vpop.eup %1150 }
0x1037   :  { %1018 = vrot.lane.b32.xlu1 %v1151_v16, %s1210_s17 }
0x10a9   :  { %v1019_v19 = vpop.permute.xlu1 %1018 }
0x10aa   :  { %v1022_v22 = vsel %vm1021_vm6, %v1019_v19, 0.0 }
0x10ab   :  { %1023 = vadd.xlane.f32.xlu0 %v1022_v22 }
0x111e   :  { %v1024_v23 = vpop.xlane.xlu0 %1023 }
0x111f   :  { %1152 = vlog2.f32 %v1024_v23 }
0x1125   :  { %v1153_v27 = vpop.eup %1152 }
0x1126   :  { %v1026_v28 = vmul.f32 0.6931472, %v1153_v27 }
0x1128   :  { %v1027_v29 = vadd.f32 %v1026_v28, %v1013_v52 }
0x112a   :  { %v1028_v30 = vsub.f32 %v1009_v48, %v1027_v29 }
0x112c   :  { %1030 = vrot.lane.b32.xlu1 %v1028_v30, %s1210_s17 }
0x119e   :  { %v1031_v33 = vpop.permute.xlu1 %1030 }
0x119f   :  { %1033 = vst.msk [vmem:[#allocation6] sm:$0x1] %vm1021_vm6, %v1031_v33 }
0x11a0   :  { %1044 = dma.vmem_to_hbm [thread:$0]  %s1040_s19, 16, %s1042_s13, [#allocation5]  }
0x11a1   :  { %1204 = dma.done.wait [#allocation5], 16  }
0x11a2   :  { %1205 = vsyncadd [#allocation5], 4294967280 }
0x11a3   :  { %1053 = vsyncpa [#allocation4], 1 }
0x11a4   :  { %1054 = vsyncpa [#allocation5], 1 }

</bundles_post_ra>
